<compile_context>
chip_gen: v6e
topology: v6e:2x2x1
jax: 0.10.0
libtpu: 0.0.40
codegen_flags: <defaults>
</compile_context>

<pallas_src>
import functools

import jax
import jax.numpy as jnp
import numpy as np
from jax.experimental import pallas as pl
from jax.experimental.pallas import tpu as pltpu

LEAKY_SLOPE = 0.2
BN_EPS = 1e-5
_MXU_MIN_CIN = 8     # below this even K = 9*Cin leaves the MXU nearly empty -> exact VPU path
_TAPS = tuple((dy, dx) for dy in (-1, 0, 1) for dx in (-1, 0, 1))


def _leaky(x):
    # max(x, 0.2*x): one VALU op instead of compare+select.
    return jnp.maximum(x, LEAKY_SLOPE * x)


def _rowcol_ids(H, W):
    """(2, H*W) f32: row and col index of every flattened pixel (8*HW resident bytes)."""
    idx = np.arange(H * W)
    return jnp.asarray(np.stack([idx // W, idx % W]).astype(np.float32))


@functools.lru_cache(maxsize=None)
def _roll_mode():
    """1 if pltpu.roll matches jnp.roll, -1 if reversed, 0 -> fall back to jnp.roll."""
    try:
        x = jnp.arange(8 * 256, dtype=jnp.float32).reshape(8, 256)

        def k(x_ref, o_ref):
            o_ref[...] = pltpu.roll(x_ref[...], 239, axis=1)

        got = np.asarray(
            pl.pallas_call(k, out_shape=jax.ShapeDtypeStruct((8, 256), jnp.float32))(x))
        if np.array_equal(got, np.asarray(jnp.roll(x, 239, axis=1))):
            return 1
        if np.array_equal(got, np.asarray(jnp.roll(x, -239, axis=1))):
            return -1
    except Exception:
        pass
    return 0


def _conv3x3_lanes(x, w_ref, b_ref, rc_ref, *, H, W, use_mxu, roll_mode):
    """3x3 same-padding conv on one image, spatial flattened into lanes.

    x:      (Cin, H*W) f32.
    w_ref:  (Cout, 9*Cin) weight, K index = ((dy+1)*3 + (dx+1))*Cin + ci; bf16 when use_mxu.
    b_ref:  (Cout, 1) f32 bias.   rc_ref: (2, H*W) f32 row / col ids.
    Returns (Cout, H*W) f32.
    """
    cin, hw = x.shape
    w = w_ref[...]                                   # tiny, resident in VMEM
    row = rc_ref[0:1, :]                             # (1, HW)
    col = rc_ref[1:2, :]
    # Cast ONCE before the 9-tap loop so rolls/selects run on half-width vregs (MXU path).
    xs = x.astype(jnp.bfloat16) if use_mxu else x

    taps = []
    acc = None
    for t, (dy, dx) in enumerate(_TAPS):
        shift = dy * W + dx                          # tap[p] = x[p + shift] (row-major)
        if shift == 0:
            src = xs
        elif roll_mode == 0:
            src = jnp.roll(xs, -shift, axis=1)       # fallback: slice+concat
        else:
            src = pltpu.roll(xs, (-shift * roll_mode) % hw, axis=1)   # XLU lane rotate
        # Only the bounds that can actually fail for this tap (center tap: none).
        conds = []
        if dy == -1:
            conds.append(row >= 1.0)
        elif dy == 1:
            conds.append(row < float(H - 1))
        if dx == -1:
            conds.append(col >= 1.0)
        elif dx == 1:
            conds.append(col < float(W - 1))
        if conds:
            ok = conds[0] if len(conds) == 1 else jnp.logical_and(conds[0], conds[1])
            tap = jnp.where(ok, src, 0.0)            # zero out-of-bounds source pixels
        else:
            tap = src

        if use_mxu:
            taps.append(tap)
        else:
            # Tiny-C exact-f32 VPU path (a K<72 matmul would waste >94% of the MXU).
            wt = w[:, t * cin:(t + 1) * cin]         # (Cout, Cin)
            for ci in range(cin):
                contrib = wt[:, ci:ci + 1] * tap[ci:ci + 1, :]   # (Cout, HW)
                acc = contrib if acc is None else acc + contrib

    if use_mxu:
        # One MXU pass over K = 9*Cin, bf16 inputs with f32 accumulation.
        k_taps = jnp.concatenate(taps, axis=0)       # (9*Cin, HW) bf16
        acc = jnp.dot(w, k_taps, preferred_element_type=jnp.float32)
    return acc + b_ref[...]


def _write_stats(st_ref, y):
    # Per-channel BN partials (sum, sumsq) for this image; two small stores, no lane concat.
    st_ref[0, :, 0:1] = jnp.sum(y, axis=1, keepdims=True)
    st_ref[0, :, 1:2] = jnp.sum(y * y, axis=1, keepdims=True)


def _make_kernels(H, W, use_mxu, roll_mode):
    conv = functools.partial(_conv3x3_lanes, H=H, W=W, use_mxu=use_mxu, roll_mode=roll_mode)

    def conv_stats_kernel(x_ref, rc_ref, w_ref, b_ref, y_ref, st_ref):
        y = conv(x_ref[0].astype(jnp.float32), w_ref, b_ref, rc_ref)
        y_ref[0] = y.astype(y_ref.dtype)
        _write_stats(st_ref, y)

    def bn_act_conv_stats_kernel(y1_ref, sc_ref, sh_ref, rc_ref, w_ref, b_ref, y2_ref, st_ref):
        a = _leaky(y1_ref[0].astype(jnp.float32) * sc_ref[...] + sh_ref[...])
        y2 = conv(a, w_ref, b_ref, rc_ref)
        y2_ref[0] = y2.astype(y2_ref.dtype)
        _write_stats(st_ref, y2)

    def bn_res_act_kernel(y2_ref, x_ref, sc_ref, sh_ref, o_ref):
        o_ref[0] = _leaky(y2_ref[0].astype(jnp.float32) * sc_ref[...] + sh_ref[...] + x_ref[0])

    return conv_stats_kernel, bn_act_conv_stats_kernel, bn_res_act_kernel


def _vmem_limit_bytes():
    # 3/4 of the chip's VMEM, clamped: ~96 MiB on v5e/v6e (128 MiB), ~48 MiB on v7x (64 MiB).
    mib = 1024 * 1024
    try:
        cap = int(pltpu.get_tpu_info().vmem_capacity_bytes)
    except Exception:
        cap = 64 * mib
    return int(min(cap, 96 * mib, max(32 * mib, (cap * 3) // 4)))


def residual_block(x_nchw, params, *, interpass_dtype=jnp.float32):
    """x_nchw: (N, C, H, W) float32; params from init_params. Returns NCHW float32.

    interpass_dtype=jnp.bfloat16 halves the HBM traffic of the y1/y2 intermediates (the
    three-pass pipeline is memory-bound at small/medium C); keep float32 for bit-tight checks.
    """
    N, C, H, W = x_nchw.shape
    HW = H * W
    use_mxu = C >= _MXU_MIN_CIN
    roll_mode = _roll_mode()
    x = x_nchw.reshape(N, C, HW).astype(jnp.float32)
    rc = _rowcol_ids(H, W)
    # Weights pre-cast once in the wrapper (halves weight DMA on the MXU path).
    w_dtype = jnp.bfloat16 if use_mxu else jnp.float32
    w1 = params["w1"].astype(w_dtype)
    w2 = params["w2"].astype(w_dtype)

    k_conv1, k_conv2, k_tail = _make_kernels(H, W, use_mxu, roll_mode)

    img_spec = pl.BlockSpec((1, C, HW), lambda n: (n, 0, 0))
    rc_spec = pl.BlockSpec((2, HW), lambda n: (0, 0))          # resident across steps
    w_spec = pl.BlockSpec((C, 9 * C), lambda n: (0, 0))        # resident across steps
    vec_spec = pl.BlockSpec((C, 1), lambda n: (0, 0))          # resident across steps
    st_spec = pl.BlockSpec((1, C, 2), lambda n: (n, 0, 0))

    cparams = pltpu.CompilerParams(
        dimension_semantics=("parallel",),     # images independent; stats are per-image partials
        vmem_limit_bytes=_vmem_limit_bytes())

    act_bytes = jnp.dtype(interpass_dtype).itemsize
    conv_cost = pl.CostEstimate(
        flops=2 * 9 * C * C * N * HW + 10 * N * C * HW,
        transcendentals=0,
        bytes_accessed=(4 + act_bytes) * N * C * HW
        + jnp.dtype(w_dtype).itemsize * 9 * C * C + 4 * (2 * HW + 3 * C))
    tail_cost = pl.CostEstimate(
        flops=4 * N * C * HW, transcendentals=0,
        bytes_accessed=(8 + act_bytes) * N * C * HW)

    def bn_affine(partial_stats, gamma, beta):
        # Finalize training-mode BN (biased variance over (N,H,W)) from per-image partials.
        tot = jnp.sum(partial_stats, axis=0)                     # (C, 2)
        cnt = float(N * HW)
        mean = tot[:, 0] / cnt
        var = jnp.maximum(tot[:, 1] / cnt - mean * mean, 0.0)    # clamp E[x^2]-mean^2 >= 0
        scale = gamma * jax.lax.rsqrt(var + BN_EPS)
        shift = beta - mean * scale
        return scale.reshape(C, 1), shift.reshape(C, 1)

    # Pass 1: conv1 (+ fused per-channel sum/sumsq partials).
    y1, st1 = pl.pallas_call(
        k_conv1,
        grid=(N,),
        in_specs=[img_spec, rc_spec, w_spec, vec_spec],
        out_specs=(img_spec, st_spec),
        out_shape=(jax.ShapeDtypeStruct((N, C, HW), interpass_dtype),
                   jax.ShapeDtypeStruct((N, C, 2), jnp.float32)),
        compiler_params=cparams,
        cost_estimate=conv_cost,
    )(x, rc, w1, params["b1"])
    sc1, sh1 = bn_affine(st1, params["g1"], params["be1"])

    # Pass 2: bn1 -> leaky_relu -> conv2 (+ fused stats).
    y2, st2 = pl.pallas_call(
        k_conv2,
        grid=(N,),
        in_specs=[img_spec, vec_spec, vec_spec, rc_spec, w_spec, vec_spec],
        out_specs=(img_spec, st_spec),
        out_shape=(jax.ShapeDtypeStruct((N, C, HW), interpass_dtype),
                   jax.ShapeDtypeStruct((N, C, 2), jnp.float32)),
        compiler_params=cparams,
        cost_estimate=conv_cost,
    )(y1, sc1, sh1, rc, w2, params["b2"])
    sc2, sh2 = bn_affine(st2, params["g2"], params["be2"])

    # Pass 3: bn2 -> + residual -> leaky_relu (lane-dense elementwise).
    out = pl.pallas_call(
        k_tail,
        grid=(N,),
        in_specs=[img_spec, img_spec, vec_spec, vec_spec],
        out_specs=img_spec,
        out_shape=jax.ShapeDtypeStruct((N, C, HW), jnp.float32),
        compiler_params=cparams,
        cost_estimate=tail_cost,
    )(y2, x, sc2, sh2)

    return out.reshape(N, C, H, W)


def init_params(key, channels):
    """Deterministic synthetic Conv/BN params. Returns (kernel_params, reference_params)."""
    k1, k2, k3, k4 = jax.random.split(key, 4)
    fan_in = channels * 9
    bound = 1.0 / np.sqrt(fan_in)

    def make_conv(kw, kb):
        w_oihw = jax.random.uniform(kw, (channels, channels, 3, 3), jnp.float32, -bound, bound)
        b = jax.random.uniform(kb, (channels,), jnp.float32, -bound, bound)
        # spectral_norm: divide by the exact top singular value of the (Cout, Cin*9) matrix
        # (the converged value of PyTorch's power iteration; weights here are synthetic).
        sigma = jnp.linalg.svd(w_oihw.reshape(channels, -1), compute_uv=False)[0]
        w_oihw = w_oihw / sigma
        # K-concat layout for the kernel: (Cout, 9*Cin), K = ((ky*3 + kx)*Cin + ci).
        w_k = jnp.transpose(w_oihw, (0, 2, 3, 1)).reshape(channels, 9 * channels)
        return w_oihw, w_k, b

    w1_oihw, w1, b1 = make_conv(k1, k2)
    w2_oihw, w2, b2 = make_conv(k3, k4)
    gamma = jnp.ones((channels,), jnp.float32)   # BN affine defaults
    beta = jnp.zeros((channels,), jnp.float32)

    kernel_params = dict(
        w1=w1, b1=b1.reshape(channels, 1), g1=gamma, be1=beta,
        w2=w2, b2=b2.reshape(channels, 1), g2=gamma, be2=beta)
    ref_params = (w1_oihw, b1, w2_oihw, b2, gamma, beta)
    return kernel_params, ref_params


def residual_block_ref(x_nchw, ref_params):
    """Pure-JAX NCHW reference with identical semantics (correctness check)."""
    w1, b1, w2, b2, gamma, beta = ref_params

    def conv(h, w, b):
        y = jax.lax.conv_general_dilated(
            h, w, window_strides=(1, 1), padding="SAME",
            dimension_numbers=("NCHW", "OIHW", "NCHW"),
            precision=jax.lax.Precision.HIGHEST)
        return y + b[None, :, None, None]

    def bn(h, g, be):
        m = jnp.mean(h, axis=(0, 2, 3), keepdims=True)
        v = jnp.mean((h - m) ** 2, axis=(0, 2, 3), keepdims=True)
        return ((h - m) * jax.lax.rsqrt(v + BN_EPS)
                * g[None, :, None, None] + be[None, :, None, None])

    def leaky(x):
        return jnp.maximum(x, LEAKY_SLOPE * x)

    h = leaky(bn(conv(x_nchw, w1, b1), gamma, beta))
    h = bn(conv(h, w2, b2), gamma, beta) + x_nchw
    return leaky(h)


if __name__ == "__main__":
    key = jax.random.PRNGKey(0)
    kx, kp, kx2, kp2 = jax.random.split(key, 4)

    # Small-C config (exact-f32 VPU contraction path), strict tolerance.
    N, C, H, W = 2, 4, 16, 16
    x = jax.random.normal(kx, (N, C, H, W), jnp.float32)      # NCHW, like PyTorch
    params, ref_params = init_params(kp, C)
    out = jax.block_until_ready(residual_block(x, params))
    ref = jax.block_until_ready(residual_block_ref(x, ref_params))
    np.testing.assert_allclose(np.asarray(out), np.asarray(ref), rtol=1e-3, atol=1e-3)

    # Production-shaped path: C >= 8 exercises the K-concat bf16 MXU dot and bf16 inter-pass
    # activations. Looser tolerance: bf16 conv inputs + bf16 intermediates + two BN rescalings
    # vs. a Precision.HIGHEST f32 reference accumulate a few-percent worst-case error.
    N2, C2, H2, W2 = 2, 16, 16, 16
    x2 = jax.random.normal(kx2, (N2, C2, H2, W2), jnp.float32)
    params2, ref_params2 = init_params(kp2, C2)
    out2 = jax.block_until_ready(residual_block(x2, params2, interpass_dtype=jnp.bfloat16))
    ref2 = jax.block_until_ready(residual_block_ref(x2, ref_params2))
    np.testing.assert_allclose(np.asarray(out2), np.asarray(ref2), rtol=5e-2, atol=5e-2)

    print("KERNEL_OK")
</pallas_src>

<mosaic_0001>
module attributes {stable_mosaic.version = 11 : i64} {
  func.func @k(%arg0: memref<8x256xf32, #tpu.memory_space<vmem>>, %arg1: memref<8x256xf32, #tpu.memory_space<vmem>>) attributes {dimension_semantics = [], scalar_prefetch = 0 : i64, scratch_operands = 0 : i64, tpu.core_type = #tpu.core_type<tc>} {
    %c0 = arith.constant 0 : index
    %c0_0 = arith.constant 0 : index
    %0 = vector.load %arg0[%c0, %c0_0] : memref<8x256xf32, #tpu.memory_space<vmem>>, vector<8x256xf32>
    %c239_i32 = arith.constant 239 : i32
    %1 = tpu.dynamic_rotate %0 by %c239_i32 dim 1 : vector<8x256xf32>, i32 -> vector<8x256xf32>
    %c0_1 = arith.constant 0 : index
    %c0_2 = arith.constant 0 : index
    %2 = vector.load %arg1[%c0_1, %c0_2] : memref<8x256xf32, #tpu.memory_space<vmem>>, vector<8x256xf32>
    tpu.vector_store %arg1[%c0_1, %c0_2], %1 {strides = array<i32>} : memref<8x256xf32, #tpu.memory_space<vmem>>, vector<8x256xf32>,
    return
  }
}

module attributes {stable_mosaic.version = 11 : i64} {
  func.func @conv_stats_kernel(%arg0: i32, %arg1: memref<1x4x256xf32, #tpu.memory_space<vmem>>, %arg2: memref<2x256xf32, #tpu.memory_space<vmem>>, %arg3: memref<4x36xf32, #tpu.memory_space<vmem>>, %arg4: memref<4x1xf32, #tpu.memory_space<vmem>>, %arg5: memref<1x4x256xf32, #tpu.memory_space<vmem>>, %arg6: memref<1x4x2xf32, #tpu.memory_space<vmem>>) attributes {dimension_semantics = [#tpu.dimension_semantics<parallel>], iteration_bounds = array<i64: 2>, scalar_prefetch = 0 : i64, scratch_operands = 0 : i64, tpu.core_type = #tpu.core_type<tc>, window_params = [{transform_indices = @transform_0, window_bounds = array<i64: 1, 4, 256>}, {pipeline_mode = #tpu.pipeline_mode<synchronous>, transform_indices = @transform_1, window_bounds = array<i64: 2, 256>}, {pipeline_mode = #tpu.pipeline_mode<synchronous>, transform_indices = @transform_2, window_bounds = array<i64: 4, 36>}, {pipeline_mode = #tpu.pipeline_mode<synchronous>, transform_indices = @transform_3, window_bounds = array<i64: 4, 1>}, {transform_indices = @transform_4, window_bounds = array<i64: 1, 4, 256>}, {transform_indices = @transform_5, window_bounds = array<i64: 1, 4, 2>}]} {
    %c0 = arith.constant 0 : index
    %c0_0 = arith.constant 0 : index
    %c0_1 = arith.constant 0 : index
    %0 = vector.load %arg1[%c0, %c0_0, %c0_1] : memref<1x4x256xf32, #tpu.memory_space<vmem>>, vector<1x4x256xf32>
    %1 = vector.shape_cast %0 : vector<1x4x256xf32> to vector<4x256xf32>
    %c0_2 = arith.constant 0 : index
    %c0_3 = arith.constant 0 : index
    %2 = vector.load %arg3[%c0_2, %c0_3] : memref<4x36xf32, #tpu.memory_space<vmem>>, vector<4x36xf32>
    %c0_4 = arith.constant 0 : index
    %c0_5 = arith.constant 0 : index
    %3 = vector.load %arg2[%c0_4, %c0_5] : memref<2x256xf32, #tpu.memory_space<vmem>>, vector<1x256xf32>
    %c1 = arith.constant 1 : index
    %c0_6 = arith.constant 0 : index
    %4 = vector.load %arg2[%c1, %c0_6] : memref<2x256xf32, #tpu.memory_space<vmem>>, vector<1x256xf32>
    %5 = vector.extract_strided_slice %1 {offsets = [0, 239], sizes = [4, 17], strides = [1, 1]} : vector<4x256xf32> to vector<4x17xf32>
    %6 = vector.extract_strided_slice %1 {offsets = [0, 0], sizes = [4, 239], strides = [1, 1]} : vector<4x256xf32> to vector<4x239xf32>
    %7 = tpu.concatenate %5, %6 in 1 : vector<4x17xf32>, vector<4x239xf32> -> vector<4x256xf32>
    %cst = arith.constant 1.000000e+00 : f32
    %8 = vector.broadcast %cst : f32 to vector<1x256xf32>
    %9 = arith.cmpf oge, %3, %8 : vector<1x256xf32>
    %cst_7 = arith.constant 1.000000e+00 : f32
    %10 = vector.broadcast %cst_7 : f32 to vector<1x256xf32>
    %11 = arith.cmpf oge, %4, %10 : vector<1x256xf32>
    %12 = arith.andi %9, %11 : vector<1x256xi1>
    %cst_8 = arith.constant 0.000000e+00 : f32
    %13 = vector.shape_cast %12 : vector<1x256xi1> to vector<1x256xi1>
    %14 = vector.broadcast %13 : vector<1x256xi1> to vector<4x256xi1>
    %15 = vector.broadcast %cst_8 : f32 to vector<4x256xf32>
    %16 = arith.select %14, %7, %15 : vector<4x256xi1>, vector<4x256xf32>
    %17 = vector.extract_strided_slice %2 {offsets = [0, 0], sizes = [4, 4], strides = [1, 1]} : vector<4x36xf32> to vector<4x4xf32>
    %18 = vector.extract_strided_slice %17 {offsets = [0, 0], sizes = [4, 1], strides = [1, 1]} : vector<4x4xf32> to vector<4x1xf32>
    %19 = vector.extract_strided_slice %16 {offsets = [0, 0], sizes = [1, 256], strides = [1, 1]} : vector<4x256xf32> to vector<1x256xf32>
    %20 = vector.broadcast %18 : vector<4x1xf32> to vector<4x256xf32>
    %21 = vector.broadcast %19 : vector<1x256xf32> to vector<4x256xf32>
    %22 = arith.mulf %20, %21 : vector<4x256xf32>
    %23 = vector.extract_strided_slice %17 {offsets = [0, 1], sizes = [4, 1], strides = [1, 1]} : vector<4x4xf32> to vector<4x1xf32>
    %24 = vector.extract_strided_slice %16 {offsets = [1, 0], sizes = [1, 256], strides = [1, 1]} : vector<4x256xf32> to vector<1x256xf32>
    %25 = vector.broadcast %23 : vector<4x1xf32> to vector<4x256xf32>
    %26 = vector.broadcast %24 : vector<1x256xf32> to vector<4x256xf32>
    %27 = arith.mulf %25, %26 : vector<4x256xf32>
    %28 = arith.addf %22, %27 : vector<4x256xf32>
    %29 = vector.extract_strided_slice %17 {offsets = [0, 2], sizes = [4, 1], strides = [1, 1]} : vector<4x4xf32> to vector<4x1xf32>
    %30 = vector.extract_strided_slice %16 {offsets = [2, 0], sizes = [1, 256], strides = [1, 1]} : vector<4x256xf32> to vector<1x256xf32>
    %31 = vector.broadcast %29 : vector<4x1xf32> to vector<4x256xf32>
    %32 = vector.broadcast %30 : vector<1x256xf32> to vector<4x256xf32>
    %33 = arith.mulf %31, %32 : vector<4x256xf32>
    %34 = arith.addf %28, %33 : vector<4x256xf32>
    %35 = vector.extract_strided_slice %17 {offsets = [0, 3], sizes = [4, 1], strides = [1, 1]} : vector<4x4xf32> to vector<4x1xf32>
    %36 = vector.extract_strided_slice %16 {offsets = [3, 0], sizes = [1, 256], strides = [1, 1]} : vector<4x256xf32> to vector<1x256xf32>
    %37 = vector.broadcast %35 : vector<4x1xf32> to vector<4x256xf32>
    %38 = vector.broadcast %36 : vector<1x256xf32> to vector<4x256xf32>
    %39 = arith.mulf %37, %38 : vector<4x256xf32>
    %40 = arith.addf %34, %39 : vector<4x256xf32>
    %41 = vector.extract_strided_slice %1 {offsets = [0, 240], sizes = [4, 16], strides = [1, 1]} : vector<4x256xf32> to vector<4x16xf32>
    %42 = vector.extract_strided_slice %1 {offsets = [0, 0], sizes = [4, 240], strides = [1, 1]} : vector<4x256xf32> to vector<4x240xf32>
    %43 = tpu.concatenate %41, %42 in 1 : vector<4x16xf32>, vector<4x240xf32> -> vector<4x256xf32>
    %cst_9 = arith.constant 1.000000e+00 : f32
    %44 = vector.broadcast %cst_9 : f32 to vector<1x256xf32>
    %45 = arith.cmpf oge, %3, %44 : vector<1x256xf32>
    %cst_10 = arith.constant 0.000000e+00 : f32
    %46 = vector.shape_cast %45 : vector<1x256xi1> to vector<1x256xi1>
    %47 = vector.broadcast %46 : vector<1x256xi1> to vector<4x256xi1>
    %48 = vector.broadcast %cst_10 : f32 to vector<4x256xf32>
    %49 = arith.select %47, %43, %48 : vector<4x256xi1>, vector<4x256xf32>
    %50 = vector.extract_strided_slice %2 {offsets = [0, 4], sizes = [4, 4], strides = [1, 1]} : vector<4x36xf32> to vector<4x4xf32>
    %51 = vector.extract_strided_slice %50 {offsets = [0, 0], sizes = [4, 1], strides = [1, 1]} : vector<4x4xf32> to vector<4x1xf32>
    %52 = vector.extract_strided_slice %49 {offsets = [0, 0], sizes = [1, 256], strides = [1, 1]} : vector<4x256xf32> to vector<1x256xf32>
    %53 = vector.broadcast %51 : vector<4x1xf32> to vector<4x256xf32>
    %54 = vector.broadcast %52 : vector<1x256xf32> to vector<4x256xf32>
    %55 = arith.mulf %53, %54 : vector<4x256xf32>
    %56 = arith.addf %40, %55 : vector<4x256xf32>
    %57 = vector.extract_strided_slice %50 {offsets = [0, 1], sizes = [4, 1], strides = [1, 1]} : vector<4x4xf32> to vector<4x1xf32>
    %58 = vector.extract_strided_slice %49 {offsets = [1, 0], sizes = [1, 256], strides = [1, 1]} : vector<4x256xf32> to vector<1x256xf32>
    %59 = vector.broadcast %57 : vector<4x1xf32> to vector<4x256xf32>
    %60 = vector.broadcast %58 : vector<1x256xf32> to vector<4x256xf32>
    %61 = arith.mulf %59, %60 : vector<4x256xf32>
    %62 = arith.addf %56, %61 : vector<4x256xf32>
    %63 = vector.extract_strided_slice %50 {offsets = [0, 2], sizes = [4, 1], strides = [1, 1]} : vector<4x4xf32> to vector<4x1xf32>
    %64 = vector.extract_strided_slice %49 {offsets = [2, 0], sizes = [1, 256], strides = [1, 1]} : vector<4x256xf32> to vector<1x256xf32>
    %65 = vector.broadcast %63 : vector<4x1xf32> to vector<4x256xf32>
    %66 = vector.broadcast %64 : vector<1x256xf32> to vector<4x256xf32>
    %67 = arith.mulf %65, %66 : vector<4x256xf32>
    %68 = arith.addf %62, %67 : vector<4x256xf32>
    %69 = vector.extract_strided_slice %50 {offsets = [0, 3], sizes = [4, 1], strides = [1, 1]} : vector<4x4xf32> to vector<4x1xf32>
    %70 = vector.extract_strided_slice %49 {offsets = [3, 0], sizes = [1, 256], strides = [1, 1]} : vector<4x256xf32> to vector<1x256xf32>
    %71 = vector.broadcast %69 : vector<4x1xf32> to vector<4x256xf32>
    %72 = vector.broadcast %70 : vector<1x256xf32> to vector<4x256xf32>
    %73 = arith.mulf %71, %72 : vector<4x256xf32>
    %74 = arith.addf %68, %73 : vector<4x256xf32>
    %75 = vector.extract_strided_slice %1 {offsets = [0, 241], sizes = [4, 15], strides = [1, 1]} : vector<4x256xf32> to vector<4x15xf32>
    %76 = vector.extract_strided_slice %1 {offsets = [0, 0], sizes = [4, 241], strides = [1, 1]} : vector<4x256xf32> to vector<4x241xf32>
    %77 = tpu.concatenate %75, %76 in 1 : vector<4x15xf32>, vector<4x241xf32> -> vector<4x256xf32>
    %cst_11 = arith.constant 1.000000e+00 : f32
    %78 = vector.broadcast %cst_11 : f32 to vector<1x256xf32>
    %79 = arith.cmpf oge, %3, %78 : vector<1x256xf32>
    %cst_12 = arith.constant 1.500000e+01 : f32
    %80 = vector.broadcast %cst_12 : f32 to vector<1x256xf32>
    %81 = arith.cmpf olt, %4, %80 : vector<1x256xf32>
    %82 = arith.andi %79, %81 : vector<1x256xi1>
    %cst_13 = arith.constant 0.000000e+00 : f32
    %83 = vector.shape_cast %82 : vector<1x256xi1> to vector<1x256xi1>
    %84 = vector.broadcast %83 : vector<1x256xi1> to vector<4x256xi1>
    %85 = vector.broadcast %cst_13 : f32 to vector<4x256xf32>
    %86 = arith.select %84, %77, %85 : vector<4x256xi1>, vector<4x256xf32>
    %87 = vector.extract_strided_slice %2 {offsets = [0, 8], sizes = [4, 4], strides = [1, 1]} : vector<4x36xf32> to vector<4x4xf32>
    %88 = vector.extract_strided_slice %87 {offsets = [0, 0], sizes = [4, 1], strides = [1, 1]} : vector<4x4xf32> to vector<4x1xf32>
    %89 = vector.extract_strided_slice %86 {offsets = [0, 0], sizes = [1, 256], strides = [1, 1]} : vector<4x256xf32> to vector<1x256xf32>
    %90 = vector.broadcast %88 : vector<4x1xf32> to vector<4x256xf32>
    %91 = vector.broadcast %89 : vector<1x256xf32> to vector<4x256xf32>
    %92 = arith.mulf %90, %91 : vector<4x256xf32>
    %93 = arith.addf %74, %92 : vector<4x256xf32>
    %94 = vector.extract_strided_slice %87 {offsets = [0, 1], sizes = [4, 1], strides = [1, 1]} : vector<4x4xf32> to vector<4x1xf32>
    %95 = vector.extract_strided_slice %86 {offsets = [1, 0], sizes = [1, 256], strides = [1, 1]} : vector<4x256xf32> to vector<1x256xf32>
    %96 = vector.broadcast %94 : vector<4x1xf32> to vector<4x256xf32>
    %97 = vector.broadcast %95 : vector<1x256xf32> to vector<4x256xf32>
    %98 = arith.mulf %96, %97 : vector<4x256xf32>
    %99 = arith.addf %93, %98 : vector<4x256xf32>
    %100 = vector.extract_strided_slice %87 {offsets = [0, 2], sizes = [4, 1], strides = [1, 1]} : vector<4x4xf32> to vector<4x1xf32>
    %101 = vector.extract_strided_slice %86 {offsets = [2, 0], sizes = [1, 256], strides = [1, 1]} : vector<4x256xf32> to vector<1x256xf32>
    %102 = vector.broadcast %100 : vector<4x1xf32> to vector<4x256xf32>
    %103 = vector.broadcast %101 : vector<1x256xf32> to vector<4x256xf32>
    %104 = arith.mulf %102, %103 : vector<4x256xf32>
    %105 = arith.addf %99, %104 : vector<4x256xf32>
    %106 = vector.extract_strided_slice %87 {offsets = [0, 3], sizes = [4, 1], strides = [1, 1]} : vector<4x4xf32> to vector<4x1xf32>
    %107 = vector.extract_strided_slice %86 {offsets = [3, 0], sizes = [1, 256], strides = [1, 1]} : vector<4x256xf32> to vector<1x256xf32>
    %108 = vector.broadcast %106 : vector<4x1xf32> to vector<4x256xf32>
    %109 = vector.broadcast %107 : vector<1x256xf32> to vector<4x256xf32>
    %110 = arith.mulf %108, %109 : vector<4x256xf32>
    %111 = arith.addf %105, %110 : vector<4x256xf32>
    %112 = vector.extract_strided_slice %1 {offsets = [0, 255], sizes = [4, 1], strides = [1, 1]} : vector<4x256xf32> to vector<4x1xf32>
    %113 = vector.extract_strided_slice %1 {offsets = [0, 0], sizes = [4, 255], strides = [1, 1]} : vector<4x256xf32> to vector<4x255xf32>
    %114 = tpu.concatenate %112, %113 in 1 : vector<4x1xf32>, vector<4x255xf32> -> vector<4x256xf32>
    %cst_14 = arith.constant 1.000000e+00 : f32
    %115 = vector.broadcast %cst_14 : f32 to vector<1x256xf32>
    %116 = arith.cmpf oge, %4, %115 : vector<1x256xf32>
    %cst_15 = arith.constant 0.000000e+00 : f32
    %117 = vector.shape_cast %116 : vector<1x256xi1> to vector<1x256xi1>
    %118 = vector.broadcast %117 : vector<1x256xi1> to vector<4x256xi1>
    %119 = vector.broadcast %cst_15 : f32 to vector<4x256xf32>
    %120 = arith.select %118, %114, %119 : vector<4x256xi1>, vector<4x256xf32>
    %121 = vector.extract_strided_slice %2 {offsets = [0, 12], sizes = [4, 4], strides = [1, 1]} : vector<4x36xf32> to vector<4x4xf32>
    %122 = vector.extract_strided_slice %121 {offsets = [0, 0], sizes = [4, 1], strides = [1, 1]} : vector<4x4xf32> to vector<4x1xf32>
    %123 = vector.extract_strided_slice %120 {offsets = [0, 0], sizes = [1, 256], strides = [1, 1]} : vector<4x256xf32> to vector<1x256xf32>
    %124 = vector.broadcast %122 : vector<4x1xf32> to vector<4x256xf32>
    %125 = vector.broadcast %123 : vector<1x256xf32> to vector<4x256xf32>
    %126 = arith.mulf %124, %125 : vector<4x256xf32>
    %127 = arith.addf %111, %126 : vector<4x256xf32>
    %128 = vector.extract_strided_slice %121 {offsets = [0, 1], sizes = [4, 1], strides = [1, 1]} : vector<4x4xf32> to vector<4x1xf32>
    %129 = vector.extract_strided_slice %120 {offsets = [1, 0], sizes = [1, 256], strides = [1, 1]} : vector<4x256xf32> to vector<1x256xf32>
    %130 = vector.broadcast %128 : vector<4x1xf32> to vector<4x256xf32>
    %131 = vector.broadcast %129 : vector<1x256xf32> to vector<4x256xf32>
    %132 = arith.mulf %130, %131 : vector<4x256xf32>
    %133 = arith.addf %127, %132 : vector<4x256xf32>
    %134 = vector.extract_strided_slice %121 {offsets = [0, 2], sizes = [4, 1], strides = [1, 1]} : vector<4x4xf32> to vector<4x1xf32>
    %135 = vector.extract_strided_slice %120 {offsets = [2, 0], sizes = [1, 256], strides = [1, 1]} : vector<4x256xf32> to vector<1x256xf32>
    %136 = vector.broadcast %134 : vector<4x1xf32> to vector<4x256xf32>
    %137 = vector.broadcast %135 : vector<1x256xf32> to vector<4x256xf32>
    %138 = arith.mulf %136, %137 : vector<4x256xf32>
    %139 = arith.addf %133, %138 : vector<4x256xf32>
    %140 = vector.extract_strided_slice %121 {offsets = [0, 3], sizes = [4, 1], strides = [1, 1]} : vector<4x4xf32> to vector<4x1xf32>
    %141 = vector.extract_strided_slice %120 {offsets = [3, 0], sizes = [1, 256], strides = [1, 1]} : vector<4x256xf32> to vector<1x256xf32>
    %142 = vector.broadcast %140 : vector<4x1xf32> to vector<4x256xf32>
    %143 = vector.broadcast %141 : vector<1x256xf32> to vector<4x256xf32>
    %144 = arith.mulf %142, %143 : vector<4x256xf32>
    %145 = arith.addf %139, %144 : vector<4x256xf32>
    %146 = vector.extract_strided_slice %2 {offsets = [0, 16], sizes = [4, 4], strides = [1, 1]} : vector<4x36xf32> to vector<4x4xf32>
    %147 = vector.extract_strided_slice %146 {offsets = [0, 0], sizes = [4, 1], strides = [1, 1]} : vector<4x4xf32> to vector<4x1xf32>
    %148 = vector.extract_strided_slice %1 {offsets = [0, 0], sizes = [1, 256], strides = [1, 1]} : vector<4x256xf32> to vector<1x256xf32>
    %149 = vector.broadcast %147 : vector<4x1xf32> to vector<4x256xf32>
    %150 = vector.broadcast %148 : vector<1x256xf32> to vector<4x256xf32>
    %151 = arith.mulf %149, %150 : vector<4x256xf32>
    %152 = arith.addf %145, %151 : vector<4x256xf32>
    %153 = vector.extract_strided_slice %146 {offsets = [0, 1], sizes = [4, 1], strides = [1, 1]} : vector<4x4xf32> to vector<4x1xf32>
    %154 = vector.extract_strided_slice %1 {offsets = [1, 0], sizes = [1, 256], strides = [1, 1]} : vector<4x256xf32> to vector<1x256xf32>
    %155 = vector.broadcast %153 : vector<4x1xf32> to vector<4x256xf32>
    %156 = vector.broadcast %154 : vector<1x256xf32> to vector<4x256xf32>
    %157 = arith.mulf %155, %156 : vector<4x256xf32>
    %158 = arith.addf %152, %157 : vector<4x256xf32>
    %159 = vector.extract_strided_slice %146 {offsets = [0, 2], sizes = [4, 1], strides = [1, 1]} : vector<4x4xf32> to vector<4x1xf32>
    %160 = vector.extract_strided_slice %1 {offsets = [2, 0], sizes = [1, 256], strides = [1, 1]} : vector<4x256xf32> to vector<1x256xf32>
    %161 = vector.broadcast %159 : vector<4x1xf32> to vector<4x256xf32>
    %162 = vector.broadcast %160 : vector<1x256xf32> to vector<4x256xf32>
    %163 = arith.mulf %161, %162 : vector<4x256xf32>
    %164 = arith.addf %158, %163 : vector<4x256xf32>
    %165 = vector.extract_strided_slice %146 {offsets = [0, 3], sizes = [4, 1], strides = [1, 1]} : vector<4x4xf32> to vector<4x1xf32>
    %166 = vector.extract_strided_slice %1 {offsets = [3, 0], sizes = [1, 256], strides = [1, 1]} : vector<4x256xf32> to vector<1x256xf32>
    %167 = vector.broadcast %165 : vector<4x1xf32> to vector<4x256xf32>
    %168 = vector.broadcast %166 : vector<1x256xf32> to vector<4x256xf32>
    %169 = arith.mulf %167, %168 : vector<4x256xf32>
    %170 = arith.addf %164, %169 : vector<4x256xf32>
    %171 = vector.extract_strided_slice %1 {offsets = [0, 1], sizes = [4, 255], strides = [1, 1]} : vector<4x256xf32> to vector<4x255xf32>
    %172 = vector.extract_strided_slice %1 {offsets = [0, 0], sizes = [4, 1], strides = [1, 1]} : vector<4x256xf32> to vector<4x1xf32>
    %173 = tpu.concatenate %171, %172 in 1 : vector<4x255xf32>, vector<4x1xf32> -> vector<4x256xf32>
    %cst_16 = arith.constant 1.500000e+01 : f32
    %174 = vector.broadcast %cst_16 : f32 to vector<1x256xf32>
    %175 = arith.cmpf olt, %4, %174 : vector<1x256xf32>
    %cst_17 = arith.constant 0.000000e+00 : f32
    %176 = vector.shape_cast %175 : vector<1x256xi1> to vector<1x256xi1>
    %177 = vector.broadcast %176 : vector<1x256xi1> to vector<4x256xi1>
    %178 = vector.broadcast %cst_17 : f32 to vector<4x256xf32>
    %179 = arith.select %177, %173, %178 : vector<4x256xi1>, vector<4x256xf32>
    %180 = vector.extract_strided_slice %2 {offsets = [0, 20], sizes = [4, 4], strides = [1, 1]} : vector<4x36xf32> to vector<4x4xf32>
    %181 = vector.extract_strided_slice %180 {offsets = [0, 0], sizes = [4, 1], strides = [1, 1]} : vector<4x4xf32> to vector<4x1xf32>
    %182 = vector.extract_strided_slice %179 {offsets = [0, 0], sizes = [1, 256], strides = [1, 1]} : vector<4x256xf32> to vector<1x256xf32>
    %183 = vector.broadcast %181 : vector<4x1xf32> to vector<4x256xf32>
    %184 = vector.broadcast %182 : vector<1x256xf32> to vector<4x256xf32>
    %185 = arith.mulf %183, %184 : vector<4x256xf32>
    %186 = arith.addf %170, %185 : vector<4x256xf32>
    %187 = vector.extract_strided_slice %180 {offsets = [0, 1], sizes = [4, 1], strides = [1, 1]} : vector<4x4xf32> to vector<4x1xf32>
    %188 = vector.extract_strided_slice %179 {offsets = [1, 0], sizes = [1, 256], strides = [1, 1]} : vector<4x256xf32> to vector<1x256xf32>
    %189 = vector.broadcast %187 : vector<4x1xf32> to vector<4x256xf32>
    %190 = vector.broadcast %188 : vector<1x256xf32> to vector<4x256xf32>
    %191 = arith.mulf %189, %190 : vector<4x256xf32>
    %192 = arith.addf %186, %191 : vector<4x256xf32>
    %193 = vector.extract_strided_slice %180 {offsets = [0, 2], sizes = [4, 1], strides = [1, 1]} : vector<4x4xf32> to vector<4x1xf32>
    %194 = vector.extract_strided_slice %179 {offsets = [2, 0], sizes = [1, 256], strides = [1, 1]} : vector<4x256xf32> to vector<1x256xf32>
    %195 = vector.broadcast %193 : vector<4x1xf32> to vector<4x256xf32>
    %196 = vector.broadcast %194 : vector<1x256xf32> to vector<4x256xf32>
    %197 = arith.mulf %195, %196 : vector<4x256xf32>
    %198 = arith.addf %192, %197 : vector<4x256xf32>
    %199 = vector.extract_strided_slice %180 {offsets = [0, 3], sizes = [4, 1], strides = [1, 1]} : vector<4x4xf32> to vector<4x1xf32>
    %200 = vector.extract_strided_slice %179 {offsets = [3, 0], sizes = [1, 256], strides = [1, 1]} : vector<4x256xf32> to vector<1x256xf32>
    %201 = vector.broadcast %199 : vector<4x1xf32> to vector<4x256xf32>
    %202 = vector.broadcast %200 : vector<1x256xf32> to vector<4x256xf32>
    %203 = arith.mulf %201, %202 : vector<4x256xf32>
    %204 = arith.addf %198, %203 : vector<4x256xf32>
    %205 = vector.extract_strided_slice %1 {offsets = [0, 15], sizes = [4, 241], strides = [1, 1]} : vector<4x256xf32> to vector<4x241xf32>
    %206 = vector.extract_strided_slice %1 {offsets = [0, 0], sizes = [4, 15], strides = [1, 1]} : vector<4x256xf32> to vector<4x15xf32>
    %207 = tpu.concatenate %205, %206 in 1 : vector<4x241xf32>, vector<4x15xf32> -> vector<4x256xf32>
    %cst_18 = arith.constant 1.500000e+01 : f32
    %208 = vector.broadcast %cst_18 : f32 to vector<1x256xf32>
    %209 = arith.cmpf olt, %3, %208 : vector<1x256xf32>
    %cst_19 = arith.constant 1.000000e+00 : f32
    %210 = vector.broadcast %cst_19 : f32 to vector<1x256xf32>
    %211 = arith.cmpf oge, %4, %210 : vector<1x256xf32>
    %212 = arith.andi %209, %211 : vector<1x256xi1>
    %cst_20 = arith.constant 0.000000e+00 : f32
    %213 = vector.shape_cast %212 : vector<1x256xi1> to vector<1x256xi1>
    %214 = vector.broadcast %213 : vector<1x256xi1> to vector<4x256xi1>
    %215 = vector.broadcast %cst_20 : f32 to vector<4x256xf32>
    %216 = arith.select %214, %207, %215 : vector<4x256xi1>, vector<4x256xf32>
    %217 = vector.extract_strided_slice %2 {offsets = [0, 24], sizes = [4, 4], strides = [1, 1]} : vector<4x36xf32> to vector<4x4xf32>
    %218 = vector.extract_strided_slice %217 {offsets = [0, 0], sizes = [4, 1], strides = [1, 1]} : vector<4x4xf32> to vector<4x1xf32>
    %219 = vector.extract_strided_slice %216 {offsets = [0, 0], sizes = [1, 256], strides = [1, 1]} : vector<4x256xf32> to vector<1x256xf32>
    %220 = vector.broadcast %218 : vector<4x1xf32> to vector<4x256xf32>
    %221 = vector.broadcast %219 : vector<1x256xf32> to vector<4x256xf32>
    %222 = arith.mulf %220, %221 : vector<4x256xf32>
    %223 = arith.addf %204, %222 : vector<4x256xf32>
    %224 = vector.extract_strided_slice %217 {offsets = [0, 1], sizes = [4, 1], strides = [1, 1]} : vector<4x4xf32> to vector<4x1xf32>
    %225 = vector.extract_strided_slice %216 {offsets = [1, 0], sizes = [1, 256], strides = [1, 1]} : vector<4x256xf32> to vector<1x256xf32>
    %226 = vector.broadcast %224 : vector<4x1xf32> to vector<4x256xf32>
    %227 = vector.broadcast %225 : vector<1x256xf32> to vector<4x256xf32>
    %228 = arith.mulf %226, %227 : vector<4x256xf32>
    %229 = arith.addf %223, %228 : vector<4x256xf32>
    %230 = vector.extract_strided_slice %217 {offsets = [0, 2], sizes = [4, 1], strides = [1, 1]} : vector<4x4xf32> to vector<4x1xf32>
    %231 = vector.extract_strided_slice %216 {offsets = [2, 0], sizes = [1, 256], strides = [1, 1]} : vector<4x256xf32> to vector<1x256xf32>
    %232 = vector.broadcast %230 : vector<4x1xf32> to vector<4x256xf32>
    %233 = vector.broadcast %231 : vector<1x256xf32> to vector<4x256xf32>
    %234 = arith.mulf %232, %233 : vector<4x256xf32>
    %235 = arith.addf %229, %234 : vector<4x256xf32>
    %236 = vector.extract_strided_slice %217 {offsets = [0, 3], sizes = [4, 1], strides = [1, 1]} : vector<4x4xf32> to vector<4x1xf32>
    %237 = vector.extract_strided_slice %216 {offsets = [3, 0], sizes = [1, 256], strides = [1, 1]} : vector<4x256xf32> to vector<1x256xf32>
    %238 = vector.broadcast %236 : vector<4x1xf32> to vector<4x256xf32>
    %239 = vector.broadcast %237 : vector<1x256xf32> to vector<4x256xf32>
    %240 = arith.mulf %238, %239 : vector<4x256xf32>
    %241 = arith.addf %235, %240 : vector<4x256xf32>
    %242 = vector.extract_strided_slice %1 {offsets = [0, 16], sizes = [4, 240], strides = [1, 1]} : vector<4x256xf32> to vector<4x240xf32>
    %243 = vector.extract_strided_slice %1 {offsets = [0, 0], sizes = [4, 16], strides = [1, 1]} : vector<4x256xf32> to vector<4x16xf32>
    %244 = tpu.concatenate %242, %243 in 1 : vector<4x240xf32>, vector<4x16xf32> -> vector<4x256xf32>
    %cst_21 = arith.constant 1.500000e+01 : f32
    %245 = vector.broadcast %cst_21 : f32 to vector<1x256xf32>
    %246 = arith.cmpf olt, %3, %245 : vector<1x256xf32>
    %cst_22 = arith.constant 0.000000e+00 : f32
    %247 = vector.shape_cast %246 : vector<1x256xi1> to vector<1x256xi1>
    %248 = vector.broadcast %247 : vector<1x256xi1> to vector<4x256xi1>
    %249 = vector.broadcast %cst_22 : f32 to vector<4x256xf32>
    %250 = arith.select %248, %244, %249 : vector<4x256xi1>, vector<4x256xf32>
    %251 = vector.extract_strided_slice %2 {offsets = [0, 28], sizes = [4, 4], strides = [1, 1]} : vector<4x36xf32> to vector<4x4xf32>
    %252 = vector.extract_strided_slice %251 {offsets = [0, 0], sizes = [4, 1], strides = [1, 1]} : vector<4x4xf32> to vector<4x1xf32>
    %253 = vector.extract_strided_slice %250 {offsets = [0, 0], sizes = [1, 256], strides = [1, 1]} : vector<4x256xf32> to vector<1x256xf32>
    %254 = vector.broadcast %252 : vector<4x1xf32> to vector<4x256xf32>
    %255 = vector.broadcast %253 : vector<1x256xf32> to vector<4x256xf32>
    %256 = arith.mulf %254, %255 : vector<4x256xf32>
    %257 = arith.addf %241, %256 : vector<4x256xf32>
    %258 = vector.extract_strided_slice %251 {offsets = [0, 1], sizes = [4, 1], strides = [1, 1]} : vector<4x4xf32> to vector<4x1xf32>
    %259 = vector.extract_strided_slice %250 {offsets = [1, 0], sizes = [1, 256], strides = [1, 1]} : vector<4x256xf32> to vector<1x256xf32>
    %260 = vector.broadcast %258 : vector<4x1xf32> to vector<4x256xf32>
    %261 = vector.broadcast %259 : vector<1x256xf32> to vector<4x256xf32>
    %262 = arith.mulf %260, %261 : vector<4x256xf32>
    %263 = arith.addf %257, %262 : vector<4x256xf32>
    %264 = vector.extract_strided_slice %251 {offsets = [0, 2], sizes = [4, 1], strides = [1, 1]} : vector<4x4xf32> to vector<4x1xf32>
    %265 = vector.extract_strided_slice %250 {offsets = [2, 0], sizes = [1, 256], strides = [1, 1]} : vector<4x256xf32> to vector<1x256xf32>
    %266 = vector.broadcast %264 : vector<4x1xf32> to vector<4x256xf32>
    %267 = vector.broadcast %265 : vector<1x256xf32> to vector<4x256xf32>
    %268 = arith.mulf %266, %267 : vector<4x256xf32>
    %269 = arith.addf %263, %268 : vector<4x256xf32>
    %270 = vector.extract_strided_slice %251 {offsets = [0, 3], sizes = [4, 1], strides = [1, 1]} : vector<4x4xf32> to vector<4x1xf32>
    %271 = vector.extract_strided_slice %250 {offsets = [3, 0], sizes = [1, 256], strides = [1, 1]} : vector<4x256xf32> to vector<1x256xf32>
    %272 = vector.broadcast %270 : vector<4x1xf32> to vector<4x256xf32>
    %273 = vector.broadcast %271 : vector<1x256xf32> to vector<4x256xf32>
    %274 = arith.mulf %272, %273 : vector<4x256xf32>
    %275 = arith.addf %269, %274 : vector<4x256xf32>
    %276 = vector.extract_strided_slice %1 {offsets = [0, 17], sizes = [4, 239], strides = [1, 1]} : vector<4x256xf32> to vector<4x239xf32>
    %277 = vector.extract_strided_slice %1 {offsets = [0, 0], sizes = [4, 17], strides = [1, 1]} : vector<4x256xf32> to vector<4x17xf32>
    %278 = tpu.concatenate %276, %277 in 1 : vector<4x239xf32>, vector<4x17xf32> -> vector<4x256xf32>
    %cst_23 = arith.constant 1.500000e+01 : f32
    %279 = vector.broadcast %cst_23 : f32 to vector<1x256xf32>
    %280 = arith.cmpf olt, %3, %279 : vector<1x256xf32>
    %cst_24 = arith.constant 1.500000e+01 : f32
    %281 = vector.broadcast %cst_24 : f32 to vector<1x256xf32>
    %282 = arith.cmpf olt, %4, %281 : vector<1x256xf32>
    %283 = arith.andi %280, %282 : vector<1x256xi1>
    %cst_25 = arith.constant 0.000000e+00 : f32
    %284 = vector.shape_cast %283 : vector<1x256xi1> to vector<1x256xi1>
    %285 = vector.broadcast %284 : vector<1x256xi1> to vector<4x256xi1>
    %286 = vector.broadcast %cst_25 : f32 to vector<4x256xf32>
    %287 = arith.select %285, %278, %286 : vector<4x256xi1>, vector<4x256xf32>
    %288 = vector.extract_strided_slice %2 {offsets = [0, 32], sizes = [4, 4], strides = [1, 1]} : vector<4x36xf32> to vector<4x4xf32>
    %289 = vector.extract_strided_slice %288 {offsets = [0, 0], sizes = [4, 1], strides = [1, 1]} : vector<4x4xf32> to vector<4x1xf32>
    %290 = vector.extract_strided_slice %287 {offsets = [0, 0], sizes = [1, 256], strides = [1, 1]} : vector<4x256xf32> to vector<1x256xf32>
    %291 = vector.broadcast %289 : vector<4x1xf32> to vector<4x256xf32>
    %292 = vector.broadcast %290 : vector<1x256xf32> to vector<4x256xf32>
    %293 = arith.mulf %291, %292 : vector<4x256xf32>
    %294 = arith.addf %275, %293 : vector<4x256xf32>
    %295 = vector.extract_strided_slice %288 {offsets = [0, 1], sizes = [4, 1], strides = [1, 1]} : vector<4x4xf32> to vector<4x1xf32>
    %296 = vector.extract_strided_slice %287 {offsets = [1, 0], sizes = [1, 256], strides = [1, 1]} : vector<4x256xf32> to vector<1x256xf32>
    %297 = vector.broadcast %295 : vector<4x1xf32> to vector<4x256xf32>
    %298 = vector.broadcast %296 : vector<1x256xf32> to vector<4x256xf32>
    %299 = arith.mulf %297, %298 : vector<4x256xf32>
    %300 = arith.addf %294, %299 : vector<4x256xf32>
    %301 = vector.extract_strided_slice %288 {offsets = [0, 2], sizes = [4, 1], strides = [1, 1]} : vector<4x4xf32> to vector<4x1xf32>
    %302 = vector.extract_strided_slice %287 {offsets = [2, 0], sizes = [1, 256], strides = [1, 1]} : vector<4x256xf32> to vector<1x256xf32>
    %303 = vector.broadcast %301 : vector<4x1xf32> to vector<4x256xf32>
    %304 = vector.broadcast %302 : vector<1x256xf32> to vector<4x256xf32>
    %305 = arith.mulf %303, %304 : vector<4x256xf32>
    %306 = arith.addf %300, %305 : vector<4x256xf32>
    %307 = vector.extract_strided_slice %288 {offsets = [0, 3], sizes = [4, 1], strides = [1, 1]} : vector<4x4xf32> to vector<4x1xf32>
    %308 = vector.extract_strided_slice %287 {offsets = [3, 0], sizes = [1, 256], strides = [1, 1]} : vector<4x256xf32> to vector<1x256xf32>
    %309 = vector.broadcast %307 : vector<4x1xf32> to vector<4x256xf32>
    %310 = vector.broadcast %308 : vector<1x256xf32> to vector<4x256xf32>
    %311 = arith.mulf %309, %310 : vector<4x256xf32>
    %312 = arith.addf %306, %311 : vector<4x256xf32>
    %c0_26 = arith.constant 0 : index
    %c0_27 = arith.constant 0 : index
    %313 = vector.load %arg4[%c0_26, %c0_27] : memref<4x1xf32, #tpu.memory_space<vmem>>, vector<4x1xf32>
    %314 = vector.broadcast %313 : vector<4x1xf32> to vector<4x256xf32>
    %315 = arith.addf %312, %314 : vector<4x256xf32>
    %c0_28 = arith.constant 0 : index
    %c0_29 = arith.constant 0 : index
    %c0_30 = arith.constant 0 : index
    %316 = vector.load %arg5[%c0_28, %c0_29, %c0_30] : memref<1x4x256xf32, #tpu.memory_space<vmem>>, vector<1x4x256xf32>
    %317 = vector.shape_cast %316 : vector<1x4x256xf32> to vector<4x256xf32>
    %318 = vector.shape_cast %315 : vector<4x256xf32> to vector<1x4x256xf32>
    tpu.vector_store %arg5[%c0_28, %c0_29, %c0_30], %318 {strides = array<i32>} : memref<1x4x256xf32, #tpu.memory_space<vmem>>, vector<1x4x256xf32>,
    %cst_31 = arith.constant dense<0.000000e+00> : vector<4xf32>
    %319 = vector.multi_reduction <add>, %315, %cst_31 [1] : vector<4x256xf32> to vector<4xf32>
    %320 = vector.shape_cast %319 : vector<4xf32> to vector<4x1xf32>
    %c0_32 = arith.constant 0 : index
    %c0_33 = arith.constant 0 : index
    %c0_34 = arith.constant 0 : index
    %321 = vector.load %arg6[%c0_32, %c0_33, %c0_34] : memref<1x4x2xf32, #tpu.memory_space<vmem>>, vector<1x4x1xf32>
    %322 = vector.shape_cast %321 : vector<1x4x1xf32> to vector<4x1xf32>
    %323 = vector.shape_cast %320 : vector<4x1xf32> to vector<1x4x1xf32>
    tpu.vector_store %arg6[%c0_32, %c0_33, %c0_34], %323 {strides = array<i32>} : memref<1x4x2xf32, #tpu.memory_space<vmem>>, vector<1x4x1xf32>,
    %324 = arith.mulf %315, %315 : vector<4x256xf32>
    %cst_35 = arith.constant dense<0.000000e+00> : vector<4xf32>
    %325 = vector.multi_reduction <add>, %324, %cst_35 [1] : vector<4x256xf32> to vector<4xf32>
    %326 = vector.shape_cast %325 : vector<4xf32> to vector<4x1xf32>
    %c0_36 = arith.constant 0 : index
    %c0_37 = arith.constant 0 : index
    %c1_38 = arith.constant 1 : index
    %327 = vector.load %arg6[%c0_36, %c0_37, %c1_38] : memref<1x4x2xf32, #tpu.memory_space<vmem>>, vector<1x4x1xf32>
    %328 = vector.shape_cast %327 : vector<1x4x1xf32> to vector<4x1xf32>
    %329 = vector.shape_cast %326 : vector<4x1xf32> to vector<1x4x1xf32>
    tpu.vector_store %arg6[%c0_36, %c0_37, %c1_38], %329 {strides = array<i32>} : memref<1x4x2xf32, #tpu.memory_space<vmem>>, vector<1x4x1xf32>,
    return
  }
  func.func @transform_0(%arg0: i32) -> (i32, i32, i32) {
    %c0_i32 = arith.constant 0 : i32
    %c0_i32_0 = arith.constant 0 : i32
    %c0_i32_1 = arith.constant 0 : i32
    return %arg0, %c0_i32, %c0_i32_0 : i32, i32, i32
  }
  func.func @transform_1(%arg0: i32) -> (i32, i32) {
    %c0_i32 = arith.constant 0 : i32
    %c0_i32_0 = arith.constant 0 : i32
    %c0_i32_1 = arith.constant 0 : i32
    return %c0_i32, %c0_i32_0 : i32, i32
  }
  func.func @transform_2(%arg0: i32) -> (i32, i32) {
    %c0_i32 = arith.constant 0 : i32
    %c0_i32_0 = arith.constant 0 : i32
    %c0_i32_1 = arith.constant 0 : i32
    return %c0_i32, %c0_i32_0 : i32, i32
  }
  func.func @transform_3(%arg0: i32) -> (i32, i32) {
    %c0_i32 = arith.constant 0 : i32
    %c0_i32_0 = arith.constant 0 : i32
    %c0_i32_1 = arith.constant 0 : i32
    return %c0_i32, %c0_i32_0 : i32, i32
  }
  func.func @transform_4(%arg0: i32) -> (i32, i32, i32) {
    %c0_i32 = arith.constant 0 : i32
    %c0_i32_0 = arith.constant 0 : i32
    %c0_i32_1 = arith.constant 0 : i32
    return %arg0, %c0_i32, %c0_i32_0 : i32, i32, i32
  }
  func.func @transform_5(%arg0: i32) -> (i32, i32, i32) {
    %c0_i32 = arith.constant 0 : i32
    %c0_i32_0 = arith.constant 0 : i32
    %c0_i32_1 = arith.constant 0 : i32
    return %arg0, %c0_i32, %c0_i32_0 : i32, i32, i32
  }
}

</mosaic_0001>

<bundles_post_ra>
// kernel: tpu_custom_call.1
= control target key start
LH: loop header
LB: loop body
LE: loop exit
PB: predicated region body
PF: predicated region fallthrough
CT: control target
= control target key end

     0   :  { %6 = vsyncpa [#allocation3], 0  ;;  %s115_s0 = inlined_call_operand.hbm [shape: f32[8,256], index: 0, kind: input, shape index: {}]   ;;  %s116_s1 = inlined_call_operand.hbm [shape: f32[8,256], index: 1, kind: output, shape index: {}]  }
   0x1   :  { %7 = vsyncpa [#allocation4], 0  ;;  %s96_s6 = smov [#allocation2]  }
   0x2   :  { %s14_s7 = sshll.u32 %s96_s6, 4  ;;  %s15_s7 = int_to_ptr.vmem [resolvable:$true] %s14_s7 }
   0x3   :  { %s60_s8 = scalar_lea.vmem %s15_s7, 256  ;;  %p65_p1 = scmp.lt.s32.totalorder %s15_s7, %s15_s7 }
   0x4   :  { %p61_p0 = scmp.ne.s32.totalorder %s15_s7, %s60_s8  ;;  %p66_p2 = scmp.lt.s32.totalorder %s60_s8, %s60_s8 }
   0x6   :  { %p67_p3 = por %p66_p2, %p65_p1 }
   0x8   :  { %p68_p4 = pnand %p67_p3, %p61_p0 }
   0xa   :  { %71 = shalt.err (!%p68_p4)
}
   0xb   :  { %17 = dma.hbm_to_vmem [thread:$0]  %s115_s0, 256, %s15_s7, [#allocation3]  }
   0xc   :  { %92 = dma.done.wait [#allocation3], 256  }
   0xd   :  { %93 = vsyncadd [#allocation3], 4294967040  ;;  %v21_v0 = vld [vmem:[#allocation2] sm:$0xff]  ;;  %s97_s11 = smov 111   ;;  %v22_v1 = vld [vmem:[#allocation2 + $0x8] sm:$0xff]  ;;  %v27_v2 = vlaneseq  ;;  %s98_s12 = smov [#allocation5]  }
   0xe   :  { %23 = vrot.lane.b32.xlu0 %v21_v0, %s97_s11  ;;  %s40_s13 = sshll.u32 %s98_s12, 4  ;;  %s41_s13 = int_to_ptr.vmem [resolvable:$true] %s40_s13 }
   0xf   :  { %v28_v3 = vand.u32 127, %v27_v2  ;;  %s72_s0 = scalar_lea.vmem %s41_s13, 256  ;;  %p77_p6 = scmp.lt.s32.totalorder %s41_s13, %s41_s13 }
  0x10   :  { %p73_p5 = scmp.ne.s32.totalorder %s41_s13, %s72_s0  ;;  %p78_p7 = scmp.lt.s32.totalorder %s72_s0, %s72_s0 }
  0x11   :  { %vm29_vm0 = vcmp.lt.s32.totalorder %v28_v3, 111 }
  0x12   :  { %25 = vrot.lane.b32.xlu0 %v22_v1, %s97_s11  ;;  %p79_p8 = por %p78_p7, %p77_p6 }
  0x14   :  { %p80_p9 = pnand %p79_p8, %p73_p5 }
  0x80   :  { %v24_v4 = vpop.permute.xlu0 %23 }
  0x84   :  { %v26_v5 = vpop.permute.xlu0 %25 }
  0x85   :  { %v30_v6 = vsel %vm29_vm0, %v24_v4, %v26_v5  ;;  %v31_v7 = vsel %vm29_vm0, %v26_v5, %v24_v4 }
  0x86   :  { %32 = vst [vmem:[#allocation5] sm:$0xff] %v30_v6  ;;  %33 = vst [vmem:[#allocation5 + $0x8] sm:$0xff] %v31_v7 }
  0x87   :  { %83 = shalt.err (!%p80_p9)
}
  0x88   :  { %43 = dma.vmem_to_hbm [thread:$0]  %s41_s13, 256, %s116_s1, [#allocation4]  }
  0x89   :  { %94 = dma.done.wait [#allocation4], 256  }
  0x8a   :  { %95 = vsyncadd [#allocation4], 4294967040 }
  0x8b   :  { %47 = vsyncpa [#allocation3], 1 }
  0x8c   :  { %48 = vsyncpa [#allocation4], 1 }

// kernel: tpu_custom_call.1
= control target key start
LH: loop header
LB: loop body
LE: loop exit
PB: predicated region body
PF: predicated region fallthrough
CT: control target
= control target key end

     0   :  { %11 = vsyncpa [#allocation3], 0  ;;  %s1914_s0 = inlined_call_operand.hbm [shape: f32[2,4,256], index: 0, kind: input, shape index: {}]   ;;  %s1915_s1 = inlined_call_operand.vmem [shape: f32[2,256], index: 1, kind: input, shape index: {}]   ;;  %s1916_s2 = inlined_call_operand.vmem [shape: f32[4,36], index: 2, kind: input, shape index: {}]   ;;  %s1917_s3 = inlined_call_operand.vmem [shape: f32[4,1], index: 3, kind: input, shape index: {}]   ;;  %s1918_s4 = inlined_call_operand.hbm [shape: f32[2,4,256], index: 4, kind: output, shape index: {0}]   ;;  %s1919_s5 = inlined_call_operand.vmem [shape: f32[2,4,2], index: 5, kind: output, shape index: {1}]  }
   0x1   :  { %13 = vsyncpa [#allocation3 + $0x1], 0 }
   0x2   :  { %14 = vsyncpa [#allocation4], 0 }
   0x3   :  { %16 = vsyncpa [#allocation4 + $0x1], 0  ;;  %s1528_s18 = smov 0   ;;  %s1530_s19 = smov 0  }
   0x4   :  { %s1532_s20 = smov 0   ;;  %s1534_s21 = smov 0  }
   0x5 LB: > { %s1549_s22 = sadd.s32 4294967295, %s1450_s21   ;;  %s1212_s23 = sadd.s32 4294967294, %s1450_s21   ;;  %s1450_s21 = sphi %s1534_s21, %s1936_s21   ;;  %s1446_s20 = sphi %s1532_s20, %s1935_s20   ;;  %s1442_s19 = sphi %s1530_s19, %s1934_s19   ;;  %s1438_s18 = sphi %s1528_s18, %s1933_s18  }
   0x6   : > { %s1553_s24 = sadd.s32 1, %s1450_s21   ;;  %s29_s25 = sadd.s32 1, %s1446_s20 }
   0x7   : > { %s26_s26 = ssub.s32 %s1450_s21, %s1553_s24  ;;  %p36_p0 = scmp.ne.s32.totalorder %s1446_s20, %s1442_s19 }
   0x8   : > { %p27_p1 = scmp.eq.s32.totalorder %s26_s26, 0  ;;  %p37_p2 = scmp.eq.s32.totalorder %s1450_s21, 0 }
   0x9   : > { %p42_p3 = scmp.ne.s32.totalorder %s1442_s19, %s1438_s18  ;;  %p43_p4 = scmp.eq.s32.totalorder %s1549_s22, 0 }
   0xa   : > { %s1565_s27 = scalar_select %p27_p1, %s1446_s20, %s29_s25  }
   0xb   : > { %p1567_p5 = por %p37_p2, %p36_p0  ;;  %p1571_p6 = por %p43_p4, %p42_p3 }
   0xc   : > { %p129_p7 = scmp.eq.s32.totalorder %s1549_s22, 1  ;;  %p135_p8 = scmp.eq.s32.totalorder %s1212_s23, 1 }
   0xd   : > { %s1923_s29 = scalar_select %p1571_p6, 1, 0 }
   0xe   : > { %p1242_p10 = scmp.lt.s32.totalorder %s1450_s21, 2  ;;  %p1578_p11 = por %p129_p7, %p36_p0 }
   0xf   : > { %p1582_p12 = por %p135_p8, %p42_p3  ;;  %s190_s7 = sand.u32 1, %s1446_s20  }
  0x10   : > { %s1924_s30 = scalar_select %p1578_p11, 1, 0 }
  0x11   : > { %s1925_s6 = scalar_select %p1582_p12, 1, 0 }
  0x12   : > { %s1228_s8 = sshll.u32 %s1450_s21, 7  ;;  %s1215_s9 = sshll.u32 %s190_s7, 3 }
  0x13   : > { %s1591_s12 = scalar_lea.hbm %s1914_s0, %s1228_s8  ;;  %s194_s13 = scalar_lea.vmem [#allocation2], %s1215_s9 }
  0x14   : > { %s202_s14 = sshll.u32 %s194_s13, 4  ;;  %p1595_p13 = pnand %p1242_p10, %p1567_p5  ;;  %s1599_s14 = int_to_ptr.vmem [resolvable:$true] %s202_s14 }
  0x15   : > { %s191_s16 = scalar_lea.sflag [#allocation3], %s190_s7  ;;  %s1358_s17 = scalar_lea.hbm %s1591_s12, 128 }
  0x16   : > { %p1359_p2 = scmp.ne.s32.totalorder %s1591_s12, %s1358_s17  ;;  %p1360_p3 = pneg %p1595_p13 }
  0x17   : > { %s1363_s26 = scalar_lea.hbm %s1914_s0, 256  ;;  %p1364_p5 = scmp.lt.s32.totalorder %s1591_s12, %s1914_s0 }
  0x18   : > { %p1361_p4 = pnand %p1360_p3, %p1359_p2  ;;  %p1365_p8 = scmp.lt.s32.totalorder %s1363_s26, %s1358_s17 }
  0x1a   : > { %p1362_p7 = pneg %p1361_p4  ;;  %p1366_p10 = por %p1365_p8, %p1364_p5 }
  0x1c   : > { %p1367_p9 = pnand %p1366_p10, %p1362_p7 }
  0x1e   : > { %1370 = shalt.err (!%p1367_p9)
}
  0x1f   : > { %s1371_s7 = scalar_lea.vmem %s1599_s14, 128  ;;  %s1452_s9 = smov [#allocation2]  }
  0x20   : > { %p1372_p0 = scmp.ne.s32.totalorder %s1599_s14, %s1371_s7  ;;  %s1376_s10 = sshll.u32 %s1452_s9, 4  ;;  %s1377_s10 = int_to_ptr.vmem [resolvable:$false] %s1376_s10 }
  0x21   : > { %s1378_s11 = scalar_lea.vmem %s1377_s10, 256  ;;  %p1379_p4 = scmp.lt.s32.totalorder %s1599_s14, %s1377_s10 }
  0x22   : > { %p1374_p1 = pnand %p1372_p0, %p1360_p3  ;;  %p1380_p12 = scmp.lt.s32.totalorder %s1378_s11, %s1371_s7 }
  0x24   : > { %p1375_p2 = pneg %p1374_p1  ;;  %p1381_p11 = por %p1380_p12, %p1379_p4 }
  0x26   : > { %p1382_p6 = pnand %p1381_p11, %p1375_p2 }
  0x28   : > { %1385 = shalt.err (!%p1382_p6)
}
  0x29   : > { %1237 = dma.hbm_to_vmem [thread:$0]  (!%p1595_p13), %s1591_s12, 128, %s1599_s14, %s191_s16  }
  0x2a   : > { %p1927_p9 = scmp.lt.s32.totalorder %s1450_s21, 3  ;;  %p1928_p7 = scmp.ge.s32.totalorder %s1450_s21, 1 }
  0x2c   : > { %p208_p0 = pnand %p1928_p7, %p1927_p9 }
  0x2d   : > { %s1626_s13 = sand.u32 (!%p208_p0), 1, %s1442_s19   ;;  %p1929_p6 = scmp.ne.s32.totalorder (!%p208_p0), %s1923_s29, 0 }
  0x2e   : > { %211 = sbr.rel (%p208_p0) target bundleno = 470 (0x1d6), region = 36  ;;  %s1219_s17 = sshll.u32 (!%p208_p0), %s1626_s13, 3 }
  0x2f   : > { %s214_s23 = scalar_lea.sflag (!%p208_p0), [#allocation3], %s1626_s13  ;;  %s217_s15 = scalar_lea.vmem (!%p208_p0), [#allocation2], %s1219_s17 }
  0x33   : > { %1429 = dma.done.wait (%p1929_p6), %s214_s23, 128  }
  0x34   : > { %1431 = vsyncadd (%p1929_p6), %s214_s23, 4294967168  ;;  %v1453_v0 = vmov 0   ;;  %v1454_v1 = vmov 2   ;;  %v1640_v2 = vld [vmem:[%s1916_s2] sm:$0xf]  ;;  %s1455_s16 = smov 17   ;;  %v273_v39 = vlaneseq }
  0x35   : > { %1320 = vset.pattern.permute.xlu0 %v1453_v0  ;;  %1322 = vset.pattern.permute.xlu1 %v1454_v1  ;;  %v1642_v3 = vld [vmem:[%s217_s15] sm:$0xff]  ;;  %v1456_v4 = vmov 1   ;;  %v1457_v6 = vmov 3   ;;  %v1458_v7 = vmov 4   ;;  %s1459_s29 = smov 16   ;;  %v1460_v8 = vmov 6  }
  0x36   : > { %262 = vrot.lane.b32.xlu1 %v1642_v3, %s1455_s16  ;;  %287 = vperm.xlu0 %1320, %v1640_v2   ;;  %v1649_v5 = vcombine.high %v1642_v3, %v1642_v3  ;;  %v1461_v9 = vmov 5   ;;  %s1462_s25 = smov 15   ;;  %v1463_v10 = vmov 9   ;;  %v1464_v11 = vmov 7   ;;  %s1472_s26 = smov 1  }
  0x37   : > { %v1465_v12 = vmov 8   ;;  %v1466_v13 = vmov 12   ;;  %v1467_v14 = vmov 10   ;;  %v1468_v15 = vmov 13   ;;  %s1474_s28 = smov 127   ;;  %s1476_s8 = smov 113  }
  0x38   : > { %v1469_v16 = vmov 16   ;;  %v1470_v17 = vmov 11   ;;  %v1471_v18 = vmov 19   ;;  %v1473_v19 = vmov 14   ;;  %v1066_v31 = vld [vmem:[%s1917_s3] sm:$0xf] }
  0x39   : > { %v1475_v20 = vmov 22   ;;  %v1477_v21 = vmov 15   ;;  %v1478_v22 = vmov 25   ;;  %v1479_v23 = vmov 17   ;;  %s1491_s10 = smov 112   ;;  %s1494_s14 = smov 111  }
  0x3a   : > { %317 = vperm.xlu1 %1322, %v1640_v2   ;;  %1321 = vset.pattern.permute.xlu0 %v1456_v4  ;;  %v1480_v24 = vmov 28   ;;  %v1481_v25 = vmov 18   ;;  %v1482_v26 = vmov 29   ;;  %v1483_v27 = vmov 20   ;;  %s1097_s7 = scalar_lea.sflag [#allocation4], %s1626_s13  ;;  %p1930_p12 = scmp.ne.s32.totalorder %s1924_s30, 0 }
  0x3b   : > { %301 = vperm.xlu0 %1321, %v1640_v2   ;;  %v1484_v28 = vmov 32   ;;  %v1485_v29 = vmov 21   ;;  %v1486_v30 = vmov 33   ;;  %v1487_v32 = vmov 23  }
  0x3c   : > { %v1488_v33 = vmov 24   ;;  %v1489_v34 = vmov 26   ;;  %v1490_v35 = vmov 27   ;;  %v1492_v36 = vmov 30  }
  0x3d   : > { %v1706_v37 = vld [vmem:[%s1915_s1] ss:$2 sm:$0x3]  ;;  %v1711_v38 = vld [vmem:[%s1915_s1 + $0x1] ss:$2 sm:$0x3] }
  0x3e   : > { %259 = vrot.lane.b32.xlu1 %v1649_v5, %s1455_s16  ;;  %v1493_v40 = vmov 31   ;;  %vm269_vm0 = vcmp.ge.f32.partialorder %v1706_v37, 1.0  ;;  %vm270_vm1 = vcmp.ge.f32.partialorder %v1711_v38, 1.0  ;;  %v1716_v42 = vshrl.u32 %v273_v39, 7  ;;  %s241_s16 = scalar_lea.vmem [#allocation5], %s1219_s17 }
  0x3f   : > { %1323 = vset.pattern.permute.xlu0 %v1457_v6  ;;  %1324 = vset.pattern.permute.xlu1 %v1458_v7  ;;  %vm271_vm2 = vmand %vm269_vm0, %vm270_vm1  ;;  %v1495_v45 = vmov 34   ;;  %vm264_vm3 = vcmask 138240   ;;  %v1496_v57 = vmov 35   ;;  %v358_v58 = vsel %vm269_vm0, 1, %v1453_v0 }
  0x40   : > { %333 = vperm.xlu0 %1323, %v1640_v2   ;;  %v1724_v46 = vsub.s32 0, %v1716_v42  ;;  %v1727_v47 = vsub.s32 1, %v1716_v42  ;;  %v272_v48 = vsel %vm271_vm2, 1, %v1453_v0  ;;  %vm353_vm6 = vcmask 130048  }
  0x41   : > { %vm445_vm9 = vcmp.lt.f32.partialorder %v1711_v38, 15.0  ;;  %vm440_vm11 = vcmask 121856   ;;  %vm529_vm14 = vcmask 7168   ;;  %vm719_vm2 = vcmask 1039360  }
  0x42   : > { %372 = vperm.xlu1 %1324, %v1640_v2   ;;  %v276_v51 = vrot.slane %v272_v48, %v1724_v46  ;;  %v280_v52 = vrot.slane %v272_v48, %v1727_v47  ;;  %v362_v62 = vrot.slane %v358_v58, %v1724_v46  ;;  %v366_v4 = vrot.slane %v358_v58, %v1727_v47  ;;  %vm446_vm10 = vmand %vm269_vm0, %vm445_vm9 }
  0x44   : > { %351 = vrot.lane.b32.xlu0 %v1642_v3, %s1459_s29  ;;  %vm281_vm4 = vcmp.eq.s32.totalorder %v276_v51, 1  ;;  %vm282_vm5 = vcmp.eq.s32.totalorder %v280_v52, 1  ;;  %vm367_vm7 = vcmp.eq.s32.totalorder %v362_v62, 1  ;;  %vm368_vm8 = vcmp.eq.s32.totalorder %v366_v4, 1 }
  0x45   : > { %1326 = vset.pattern.permute.xlu0 %v1460_v8 }
  0x46   : > { %348 = vrot.lane.b32.xlu1 %v1649_v5, %s1459_s29  ;;  %s1229_s29 = sshll.u32 %s1549_s22, 7 }
  0x47   : > { %1325 = vset.pattern.permute.xlu1 %v1461_v9  ;;  %v1745_v9 = vsub.s32 2, %v1716_v42 }
  0x48   : > { %404 = vperm.xlu0 %1326, %v1640_v2  }
  0x4a   : > { %388 = vperm.xlu1 %1325, %v1640_v2  }
  0x4c   : > { %435 = vrot.lane.b32.xlu0 %v1649_v5, %s1462_s25 }
  0x4d   : > { %1329 = vset.pattern.permute.xlu0 %v1463_v10 }
  0x4e   : > { %1327 = vset.pattern.permute.xlu1 %v1464_v11 }
  0x4f   : > { %420 = vperm.xlu1 %1327, %v1640_v2  }
  0x50   : > { %477 = vperm.xlu0 %1329, %v1640_v2  }
  0x53   : > { %1328 = vset.pattern.permute.xlu1 %v1465_v12 }
  0x54   : > { %461 = vperm.xlu1 %1328, %v1640_v2   ;;  %1332 = vset.pattern.permute.xlu0 %v1466_v13 }
  0x55   : > { %548 = vperm.xlu0 %1332, %v1640_v2  }
  0x58   : > { %438 = vrot.lane.b32.xlu1 %v1642_v3, %s1462_s25  ;;  %s1115_s25 = sshll.u32 %s241_s16, 4  ;;  %s1116_s25 = int_to_ptr.vmem [resolvable:$true] %s1115_s25 }
  0x59   : > { %1330 = vset.pattern.permute.xlu1 %v1467_v14  ;;  %1333 = vset.pattern.permute.xlu0 %v1468_v15  ;;  %s1386_s9 = scalar_lea.vmem %s1116_s25, 128 }
  0x5a   : > { %564 = vperm.xlu0 %1333, %v1640_v2   ;;  %p1387_p11 = scmp.ne.s32.totalorder %s1116_s25, %s1386_s9 }
  0x5c   : > { %493 = vperm.xlu1 %1330, %v1640_v2   ;;  %p1388_p13 = pnand %p1387_p11, %p1930_p12 }
  0x5e   : > { %1336 = vset.pattern.permute.xlu0 %v1469_v16  ;;  %v1749_v16 = vsub.s32 3, %v1716_v42  ;;  %p1389_p1 = pneg %p1388_p13 }
  0x5f   : > { %612 = vperm.xlu0 %1336, %v1640_v2  }
  0x60   : > { %1331 = vset.pattern.permute.xlu1 %v1470_v17 }
  0x61   : > { %509 = vperm.xlu1 %1331, %v1640_v2  }
  0x63   : > { %1339 = vset.pattern.permute.xlu0 %v1471_v18 }
  0x64   : > { %690 = vperm.xlu0 %1339, %v1640_v2  }
  0x65   : > { %524 = vrot.lane.b32.xlu1 %v1649_v5, %s1472_s26 }
  0x66   : > { %1334 = vset.pattern.permute.xlu1 %v1473_v19 }
  0x68   : > { %717 = vrot.lane.b32.xlu0 %v1649_v5, %s1474_s28 }
  0x69   : > { %527 = vrot.lane.b32.xlu1 %v1642_v3, %s1472_s26  ;;  %1342 = vset.pattern.permute.xlu0 %v1475_v20 }
  0x6c   : > { %771 = vperm.xlu0 %1342, %v1640_v2  }
  0x6d   : > { %580 = vperm.xlu1 %1334, %v1640_v2  }
  0x70   : > { %802 = vrot.lane.b32.xlu0 %v1642_v3, %s1476_s8 }
  0x71   : > { %1335 = vset.pattern.permute.xlu1 %v1477_v21  ;;  %1345 = vset.pattern.permute.xlu0 %v1478_v22 }
  0x72   : > { %596 = vperm.xlu1 %1335, %v1640_v2  }
  0x74   : > { %844 = vperm.xlu0 %1345, %v1640_v2  }
  0x76   : > { %1337 = vset.pattern.permute.xlu1 %v1479_v23 }
  0x77   : > { %638 = vperm.xlu1 %1337, %v1640_v2  }
  0x78   : > { %1348 = vset.pattern.permute.xlu0 %v1480_v24 }
  0x79   : > { %915 = vperm.xlu0 %1348, %v1640_v2  }
  0x7b   : > { %1338 = vset.pattern.permute.xlu1 %v1481_v25 }
  0x7c   : > { %664 = vperm.xlu1 %1338, %v1640_v2  }
  0x7d   : > { %1349 = vset.pattern.permute.xlu0 %v1482_v26  ;;  %v447_v26 = vsel %vm446_vm10, 1, %v1453_v0  ;;  %vm895_vm10 = vcmask 916480  }
  0x7e   : > { %931 = vperm.xlu0 %1349, %v1640_v2  }
  0x80   : > { %1340 = vset.pattern.permute.xlu1 %v1483_v27 }
  0x81   : > { %739 = vperm.xlu1 %1340, %v1640_v2  }
  0x82   : > { %1352 = vset.pattern.permute.xlu0 %v1484_v28 }
  0x83   : > { %1003 = vperm.xlu0 %1352, %v1640_v2  }
  0x85   : > { %715 = vrot.lane.b32.xlu1 %v1642_v3, %s1474_s28 }
  0x86   : > { %1341 = vset.pattern.permute.xlu1 %v1485_v29 }
  0x87   : > { %1353 = vset.pattern.permute.xlu0 %v1486_v30 }
  0x88   : > { %1019 = vperm.xlu0 %1353, %v1640_v2  }
  0x89   : > { %755 = vperm.xlu1 %1341, %v1640_v2  }
  0x8c   : > { %1356 = vset.pattern.permute.xlu0 %v1453_v0 }
  0x8d   : > { %1343 = vset.pattern.permute.xlu1 %v1487_v32  ;;  %1069 = vperm.xlu0 %1356, %v1066_v31  }
  0x8e   : > { %787 = vperm.xlu1 %1343, %v1640_v2  }
  0x92   : > { %1344 = vset.pattern.permute.xlu1 %v1488_v33 }
  0x93   : > { %828 = vperm.xlu1 %1344, %v1640_v2  }
  0x97   : > { %804 = vrot.lane.b32.xlu1 %v1649_v5, %s1476_s8  ;;  %s1113_s8 = scalar_lea.hbm %s1918_s4, %s1229_s29 }
  0x98   : > { %1346 = vset.pattern.permute.xlu1 %v1489_v34  ;;  %v451_v34 = vrot.slane %v447_v26, %v1724_v46 }
  0x9a   : > { %vm456_vm12 = vcmp.eq.s32.totalorder %v451_v34, 1 }
  0x9b   : > { %860 = vperm.xlu1 %1346, %v1640_v2  }
  0x9f   : > { %1347 = vset.pattern.permute.xlu1 %v1490_v35  ;;  %v455_v35 = vrot.slane %v447_v26, %v1727_v47 }
  0xa0   : > { %876 = vperm.xlu1 %1347, %v1640_v2  }
  0xa1   : > { %vm457_vm13 = vcmp.eq.s32.totalorder %v455_v35, 1 }
  0xa4   : > { %891 = vrot.lane.b32.xlu1 %v1642_v3, %s1491_s10 }
  0xa5   : > { %1350 = vset.pattern.permute.xlu1 %v1492_v36 }
  0xa8   : > { %893 = vrot.lane.b32.xlu1 %v1649_v5, %s1491_s10  ;;  %v263_v41 = vpop.permute.xlu1 %262  ;;  %s1497_s10 = smov [#allocation5]  }
  0xa9   : > { %s1390_s17 = sshll.u32 %s1497_s10, 4  ;;  %s1391_s17 = int_to_ptr.vmem [resolvable:$false] %s1390_s17 }
  0xaa   : > { %s1392_s11 = scalar_lea.vmem %s1391_s17, 256  ;;  %p1393_p3 = scmp.lt.s32.totalorder %s1116_s25, %s1391_s17 }
  0xab   : > { %p1394_p5 = scmp.lt.s32.totalorder %s1392_s11, %s1386_s9 }
  0xac   : > { %947 = vperm.xlu1 %1350, %v1640_v2  }
  0xad   : > { %p1395_p8 = por %p1394_p5, %p1393_p3 }
  0xaf   : > { %p1396_p10 = pnand %p1395_p8, %p1389_p1 }
  0xb0   : > { %1351 = vset.pattern.permute.xlu1 %v1493_v40 }
  0xb1   : > { %963 = vperm.xlu1 %1351, %v1640_v2   ;;  %v288_v43 = vpop.permute.xlu0 %287 }
  0xb5   : > { %v318_v44 = vpop.permute.xlu1 %317  ;;  %978 = vrot.lane.b32.xlu1 %v1642_v3, %s1494_s14 }
  0xb6   : > { %1354 = vset.pattern.permute.xlu1 %v1495_v45  ;;  %v302_v50 = vpop.permute.xlu0 %301 }
  0xb9   : > { %980 = vrot.lane.b32.xlu1 %v1649_v5, %s1494_s14  ;;  %v260_v49 = vpop.permute.xlu1 %259 }
  0xba   : > { %v265_v54 = vsel %vm264_vm3, %v263_v41, %v260_v49  ;;  %v268_v55 = vsel %vm264_vm3, %v260_v49, %v263_v41 }
  0xbb   : > { %v334_v56 = vpop.permute.xlu0 %333  ;;  %v283_v60 = vsel %vm281_vm4, %v268_v55, 0.0  ;;  %v284_v61 = vsel %vm282_vm5, %v265_v54, 0.0  ;;  %vm812_vm5 = vcmp.lt.f32.partialorder %v1706_v37, 15.0 }
  0xbc   : > { %v293_v63 = vrot.slane %v283_v60, %v1724_v46  ;;  %v297_v1 = vrot.slane %v284_v61, %v1724_v46  ;;  %v307_v6 = vrot.slane %v283_v60, %v1727_v47  ;;  %v311_v7 = vrot.slane %v284_v61, %v1727_v47 }
  0xbd   : > { %1035 = vperm.xlu1 %1354, %v1640_v2   ;;  %v373_v53 = vpop.permute.xlu1 %372  ;;  %v323_v17 = vrot.slane %v283_v60, %v1745_v9  ;;  %v327_v18 = vrot.slane %v284_v61, %v1745_v9  ;;  %v339_v23 = vrot.slane %v283_v60, %v1749_v16  ;;  %v343_v24 = vrot.slane %v284_v61, %v1749_v16 }
  0xbe   : > { %v299_v10 = vmul.f32 %v297_v1, %v288_v43  ;;  %v312_v11 = vmul.f32 %v307_v6, %v302_v50  ;;  %v313_v12 = vmul.f32 %v311_v7, %v302_v50  ;;  %v534_v7 = vsel %vm270_vm1, 1, %v1453_v0 }
  0xbf   : > { %v352_v8 = vpop.permute.xlu0 %351  ;;  %v328_v27 = vmul.f32 %v323_v17, %v318_v44  ;;  %v329_v28 = vmul.f32 %v327_v18, %v318_v44  ;;  %v344_v39 = vmul.f32 %v339_v23, %v334_v56  ;;  %v345_v40 = vmul.f32 %v343_v24, %v334_v56 }
  0xc0   : > { %v315_v22 = vadd.f32 %v313_v12, %v299_v10  ;;  %v538_v18 = vrot.slane %v534_v7, %v1724_v46 }
  0xc1   : > { %1355 = vset.pattern.permute.xlu1 %v1496_v57  ;;  %v349_v59 = vpop.permute.xlu1 %348 }
  0xc2   : > { %1051 = vperm.xlu1 %1355, %v1640_v2   ;;  %v298_v2 = vmul.f32 %v293_v63, %v288_v43  ;;  %v354_v13 = vsel %vm353_vm6, %v352_v8, %v349_v59  ;;  %v357_v14 = vsel %vm353_vm6, %v349_v59, %v352_v8  ;;  %v331_v33 = vadd.f32 %v329_v28, %v315_v22  ;;  %vm813_vm6 = vmand %vm812_vm5, %vm270_vm1 }
  0xc3   : > { %v369_v19 = vsel %vm367_vm7, %v357_v14, 0.0  ;;  %v370_v20 = vsel %vm368_vm8, %v354_v13, 0.0  ;;  %v405_v31 = vpop.permute.xlu0 %404  ;;  %vm543_vm15 = vcmp.eq.s32.totalorder %v538_v18, 1  ;;  %vm806_vm1 = vcmask 924672  }
  0xc4   : > { %v314_v21 = vadd.f32 %v312_v11, %v298_v2  ;;  %v378_v29 = vrot.slane %v369_v19, %v1724_v46  ;;  %v382_v30 = vrot.slane %v370_v20, %v1724_v46  ;;  %v347_v44 = vadd.f32 %v345_v40, %v331_v33 }
  0xc5   : > { %v389_v5 = vpop.permute.xlu1 %388  ;;  %v394_v49 = vrot.slane %v369_v19, %v1727_v47  ;;  %v398_v50 = vrot.slane %v370_v20, %v1727_v47  ;;  %v410_v58 = vrot.slane %v369_v19, %v1745_v9  ;;  %v414_v56 = vrot.slane %v370_v20, %v1745_v9 }
  0xc6   : > { %v330_v32 = vadd.f32 %v328_v27, %v314_v21  ;;  %v383_v41 = vmul.f32 %v378_v29, %v373_v53  ;;  %v384_v43 = vmul.f32 %v382_v30, %v373_v53  ;;  %v426_v4 = vrot.slane %v369_v19, %v1749_v16 }
  0xc7   : > { %v436_v45 = vpop.permute.xlu0 %435  ;;  %v399_v53 = vmul.f32 %v394_v49, %v389_v5  ;;  %v400_v59 = vmul.f32 %v398_v50, %v389_v5  ;;  %v430_v6 = vrot.slane %v370_v20, %v1749_v16  ;;  %v415_v8 = vmul.f32 %v410_v58, %v405_v31 }
  0xc8   : > { %v346_v48 = vadd.f32 %v344_v39, %v330_v32  ;;  %v386_v54 = vadd.f32 %v384_v43, %v347_v44  ;;  %v416_v2 = vmul.f32 %v414_v56, %v405_v31  ;;  %v542_v19 = vrot.slane %v534_v7, %v1727_v47 }
  0xca   : > { %v421_v15 = vpop.permute.xlu1 %420  ;;  %v385_v52 = vadd.f32 %v383_v41, %v346_v48  ;;  %v402_v63 = vadd.f32 %v400_v59, %v386_v54  ;;  %vm544_vm0 = vcmp.eq.s32.totalorder %v542_v19, 1 }
  0xcb   : > { %v431_v13 = vmul.f32 %v426_v4, %v421_v15  ;;  %v432_v14 = vmul.f32 %v430_v6, %v421_v15  ;;  %v478_v28 = vpop.permute.xlu0 %477  ;;  %v621_v6 = vsub.s32 4, %v1716_v42 }
  0xcc   : > { %v401_v62 = vadd.f32 %v399_v53, %v385_v52  ;;  %v418_v12 = vadd.f32 %v416_v2, %v402_v63  ;;  %v618_v2 = vrot.slane %v1642_v3, %v1724_v46 }
  0xce   : > { %v417_v5 = vadd.f32 %v415_v8, %v401_v62  ;;  %v434_v23 = vadd.f32 %v432_v14, %v418_v12  ;;  %v622_v12 = vrot.slane %v1642_v3, %v621_v6  ;;  %v647_v14 = vsub.s32 5, %v1716_v42 }
  0xcf   : > { %v462_v25 = vpop.permute.xlu1 %461 }
  0xd0   : > { %v433_v22 = vadd.f32 %v431_v13, %v417_v5  ;;  %v549_v52 = vpop.permute.xlu0 %548 }
  0xd3   : > { %v439_v36 = vpop.permute.xlu1 %438 }
  0xd4   : > { %v441_v55 = vsel %vm440_vm11, %v439_v36, %v436_v45  ;;  %v444_v57 = vsel %vm440_vm11, %v436_v45, %v439_v36 }
  0xd5   : > { %v458_v60 = vsel %vm456_vm12, %v444_v57, 0.0  ;;  %v459_v61 = vsel %vm457_vm13, %v441_v55, 0.0  ;;  %vm988_vm13 = vmand %vm812_vm5, %vm445_vm9 }
  0xd6   : > { %v467_v10 = vrot.slane %v458_v60, %v1724_v46  ;;  %v471_v11 = vrot.slane %v459_v61, %v1724_v46  ;;  %v483_v24 = vrot.slane %v458_v60, %v1727_v47  ;;  %v487_v26 = vrot.slane %v459_v61, %v1727_v47 }
  0xd7   : > { %v494_v51 = vpop.permute.xlu1 %493  ;;  %v499_v34 = vrot.slane %v458_v60, %v1745_v9  ;;  %v515_v43 = vrot.slane %v458_v60, %v1749_v16  ;;  %v519_v45 = vrot.slane %v459_v61, %v1749_v16 }
  0xd8   : > { %v472_v20 = vmul.f32 %v467_v10, %v462_v25  ;;  %v473_v21 = vmul.f32 %v471_v11, %v462_v25  ;;  %v488_v32 = vmul.f32 %v483_v24, %v478_v28  ;;  %v489_v33 = vmul.f32 %v487_v26, %v478_v28 }
  0xd9   : > { %v503_v25 = vrot.slane %v459_v61, %v1745_v9  ;;  %v504_v48 = vmul.f32 %v499_v34, %v494_v51  ;;  %v644_v28 = vrot.slane %v1642_v3, %v1727_v47 }
  0xda   : > { %v474_v29 = vadd.f32 %v472_v20, %v433_v22  ;;  %v475_v15 = vadd.f32 %v473_v21, %v434_v23  ;;  %v628_v20 = vrot.slane %v618_v2, %v1724_v46  ;;  %v673_v21 = vsub.s32 6, %v1716_v42 }
  0xdb   : > { %v505_v44 = vmul.f32 %v503_v25, %v494_v51  ;;  %v565_v51 = vpop.permute.xlu0 %564 }
  0xdc   : > { %v510_v1 = vpop.permute.xlu1 %509  ;;  %v490_v40 = vadd.f32 %v488_v32, %v474_v29  ;;  %v491_v41 = vadd.f32 %v489_v33, %v475_v15  ;;  %v648_v29 = vrot.slane %v1642_v3, %v647_v14 }
  0xdd   : > { %v520_v58 = vmul.f32 %v515_v43, %v510_v1  ;;  %v521_v56 = vmul.f32 %v519_v45, %v510_v1  ;;  %v654_v43 = vrot.slane %v644_v28, %v1727_v47 }
  0xde   : > { %v506_v55 = vadd.f32 %v504_v48, %v490_v40  ;;  %v507_v57 = vadd.f32 %v505_v44, %v491_v41  ;;  %v658_v45 = vrot.slane %v648_v29, %v1727_v47 }
  0xdf   : > { %v613_v13 = vpop.permute.xlu0 %612 }
  0xe0   : > { %v525_v17 = vpop.permute.xlu1 %524  ;;  %v522_v62 = vadd.f32 %v520_v58, %v506_v55  ;;  %v523_v63 = vadd.f32 %v521_v56, %v507_v57 }
  0xe3   : > { %v691_v15 = vpop.permute.xlu0 %690 }
  0xe4   : > { %v528_v27 = vpop.permute.xlu1 %527 }
  0xe5   : > { %v530_v30 = vsel %vm529_vm14, %v528_v27, %v525_v17  ;;  %v533_v31 = vsel %vm529_vm14, %v525_v17, %v528_v27  ;;  %v632_v27 = vrot.slane %v622_v12, %v1724_v46  ;;  %v814_v12 = vsel %vm813_vm6, 1, %v1453_v0 }
  0xe6   : > { %v545_v36 = vsel %vm543_vm15, %v533_v31, 0.0  ;;  %v546_v39 = vsel %vm544_vm0, %v530_v30, 0.0  ;;  %v725_v30 = vsel %vm445_vm9, 1, %v1453_v0  ;;  %vm982_vm9 = vcmask 908288  }
  0xe7   : > { %v554_v49 = vrot.slane %v545_v36, %v1724_v46  ;;  %v558_v50 = vrot.slane %v546_v39, %v1724_v46  ;;  %v570_v60 = vrot.slane %v545_v36, %v1727_v47  ;;  %v574_v61 = vrot.slane %v546_v39, %v1727_v47  ;;  %v718_v48 = vpop.permute.xlu0 %717 }
  0xe8   : > { %v581_v35 = vpop.permute.xlu1 %580  ;;  %v586_v1 = vrot.slane %v545_v36, %v1745_v9  ;;  %v590_v5 = vrot.slane %v546_v39, %v1745_v9  ;;  %v602_v24 = vrot.slane %v545_v36, %v1749_v16  ;;  %v606_v26 = vrot.slane %v546_v39, %v1749_v16 }
  0xe9   : > { %v559_v53 = vmul.f32 %v554_v49, %v549_v52  ;;  %v560_v59 = vmul.f32 %v558_v50, %v549_v52  ;;  %v575_v10 = vmul.f32 %v570_v60, %v565_v51  ;;  %v576_v11 = vmul.f32 %v574_v61, %v565_v51 }
  0xea   : > { %v591_v22 = vmul.f32 %v586_v1, %v581_v35  ;;  %v592_v23 = vmul.f32 %v590_v5, %v581_v35  ;;  %v670_v35 = vrot.slane %v1642_v3, %v1745_v9  ;;  %v674_v36 = vrot.slane %v1642_v3, %v673_v21 }
  0xeb   : > { %v561_v7 = vadd.f32 %v559_v53, %v522_v62  ;;  %v562_v8 = vadd.f32 %v560_v59, %v523_v63  ;;  %v699_v39 = vsub.s32 7, %v1716_v42  ;;  %v729_v40 = vrot.slane %v725_v30, %v1724_v46 }
  0xec   : > { %v733_v41 = vrot.slane %v725_v30, %v1727_v47  ;;  %v633_v50 = vmul.f32 %v628_v20, %v613_v13  ;;  %v634_v52 = vmul.f32 %v632_v27, %v613_v13  ;;  %v680_v55 = vrot.slane %v670_v35, %v1745_v9 }
  0xed   : > { %v597_v54 = vpop.permute.xlu1 %596  ;;  %v577_v18 = vadd.f32 %v575_v10, %v561_v7  ;;  %v578_v19 = vadd.f32 %v576_v11, %v562_v8  ;;  %v684_v57 = vrot.slane %v674_v36, %v1745_v9  ;;  %v696_v42 = vrot.slane %v1642_v3, %v1749_v16 }
  0xee   : > { %v607_v33 = vmul.f32 %v602_v24, %v597_v54  ;;  %v608_v34 = vmul.f32 %v606_v26, %v597_v54  ;;  %v700_v58 = vrot.slane %v1642_v3, %v699_v39  ;;  %vm734_vm3 = vcmp.eq.s32.totalorder %v729_v40, 1 }
  0xef   : > { %v593_v31 = vadd.f32 %v591_v22, %v577_v18  ;;  %v594_v32 = vadd.f32 %v592_v23, %v578_v19  ;;  %vm735_vm4 = vcmp.eq.s32.totalorder %v733_v41, 1  ;;  %v706_v2 = vrot.slane %v696_v42, %v1749_v16  ;;  %v772_v19 = vpop.permute.xlu0 %771 }
  0xf0   : > { %v710_v10 = vrot.slane %v700_v58, %v1749_v16  ;;  %v818_v22 = vrot.slane %v814_v12, %v1724_v46  ;;  %v822_v23 = vrot.slane %v814_v12, %v1727_v47  ;;  %vm1079_vm0 = vcmask 1043456  }
  0xf1   : > { %v609_v44 = vadd.f32 %v607_v33, %v593_v31  ;;  %v610_v49 = vadd.f32 %v608_v34, %v594_v32 }
  0xf2   : > { %v639_v4 = vpop.permute.xlu1 %638  ;;  %v712_v18 = vmul.f32 %v710_v10, %v691_v15  ;;  %vm823_vm7 = vcmp.eq.s32.totalorder %v818_v22, 1  ;;  %vm824_vm8 = vcmp.eq.s32.totalorder %v822_v23, 1 }
  0xf3   : > { %v635_v59 = vadd.f32 %v633_v50, %v609_v44  ;;  %v636_v62 = vadd.f32 %v634_v52, %v610_v49  ;;  %v659_v63 = vmul.f32 %v654_v43, %v639_v4  ;;  %v660_v60 = vmul.f32 %v658_v45, %v639_v4  ;;  %v803_v32 = vpop.permute.xlu0 %802 }
  0xf5   : > { %v661_v3 = vadd.f32 %v659_v63, %v635_v59  ;;  %v662_v11 = vadd.f32 %v660_v60, %v636_v62  ;;  %v901_v63 = vsel %vm812_vm5, 1, %v1453_v0 }
  0xf6   : > { %v905_v10 = vrot.slane %v901_v63, %v1724_v46 }
  0xf7   : > { %v665_v17 = vpop.permute.xlu1 %664 }
  0xf8   : > { %v685_v7 = vmul.f32 %v680_v55, %v665_v17  ;;  %v686_v8 = vmul.f32 %v684_v57, %v665_v17  ;;  %v711_v17 = vmul.f32 %v706_v2, %v691_v15  ;;  %vm910_vm11 = vcmp.eq.s32.totalorder %v905_v10, 1 }
  0xfa   : > { %v687_v13 = vadd.f32 %v685_v7, %v661_v3  ;;  %v688_v14 = vadd.f32 %v686_v8, %v662_v11  ;;  %v845_v7 = vpop.permute.xlu0 %844  ;;  %v909_v3 = vrot.slane %v901_v63, %v1727_v47 }
  0xfc   : > { %v740_v25 = vpop.permute.xlu1 %739  ;;  %v713_v24 = vadd.f32 %v711_v17, %v687_v13  ;;  %v714_v26 = vadd.f32 %v712_v18, %v688_v14  ;;  %vm911_vm12 = vcmp.eq.s32.totalorder %v909_v3, 1 }
 0x100   : > { %v716_v54 = vpop.permute.xlu1 %715 }
 0x101   : > { %v720_v56 = vsel %vm719_vm2, %v716_v54, %v718_v48  ;;  %v724_v53 = vsel %vm719_vm2, %v718_v48, %v716_v54 }
 0x102   : > { %v736_v51 = vsel %vm734_vm3, %v720_v56, 0.0  ;;  %v737_v6 = vsel %vm735_vm4, %v724_v53, 0.0 }
 0x103   : > { %v745_v1 = vrot.slane %v736_v51, %v1724_v46  ;;  %v749_v4 = vrot.slane %v737_v6, %v1724_v46  ;;  %v761_v27 = vrot.slane %v736_v51, %v1727_v47  ;;  %v765_v28 = vrot.slane %v737_v6, %v1727_v47 }
 0x104   : > { %v756_v61 = vpop.permute.xlu1 %755  ;;  %v777_v15 = vrot.slane %v736_v51, %v1745_v9  ;;  %v781_v33 = vrot.slane %v737_v6, %v1745_v9  ;;  %v793_v48 = vrot.slane %v736_v51, %v1749_v16  ;;  %v797_v44 = vrot.slane %v737_v6, %v1749_v16 }
 0x105   : > { %v750_v20 = vmul.f32 %v745_v1, %v740_v25  ;;  %v751_v21 = vmul.f32 %v749_v4, %v740_v25  ;;  %v766_v34 = vmul.f32 %v761_v27, %v756_v61  ;;  %v767_v25 = vmul.f32 %v765_v28, %v756_v61  ;;  %v916_v27 = vpop.permute.xlu0 %915 }
 0x106   : > { %v782_v49 = vmul.f32 %v777_v15, %v772_v19  ;;  %v783_v50 = vmul.f32 %v781_v33, %v772_v19 }
 0x107   : > { %v752_v30 = vadd.f32 %v750_v20, %v713_v24  ;;  %v753_v31 = vadd.f32 %v751_v21, %v714_v26 }
 0x109   : > { %v788_v5 = vpop.permute.xlu1 %787  ;;  %v768_v40 = vadd.f32 %v766_v34, %v752_v30  ;;  %v769_v41 = vadd.f32 %v767_v25, %v753_v31 }
 0x10a   : > { %v798_v58 = vmul.f32 %v793_v48, %v788_v5  ;;  %v799_v56 = vmul.f32 %v797_v44, %v788_v5  ;;  %v989_v44 = vsel %vm988_vm13, 1, %v1453_v0 }
 0x10b   : > { %v784_v57 = vadd.f32 %v782_v49, %v768_v40  ;;  %v785_v42 = vadd.f32 %v783_v50, %v769_v41  ;;  %v932_v41 = vpop.permute.xlu0 %931  ;;  %v993_v37 = vrot.slane %v989_v44, %v1724_v46 }
 0x10d   : > { %v800_v60 = vadd.f32 %v798_v58, %v784_v57  ;;  %v801_v61 = vadd.f32 %v799_v56, %v785_v42  ;;  %vm998_vm14 = vcmp.eq.s32.totalorder %v993_v37, 1 }
 0x10e   : > { %v829_v29 = vpop.permute.xlu1 %828 }
 0x112   : > { %v805_v35 = vpop.permute.xlu1 %804 }
 0x113   : > { %v807_v36 = vsel %vm806_vm1, %v803_v32, %v805_v35  ;;  %v811_v39 = vsel %vm806_vm1, %v805_v35, %v803_v32 }
 0x114   : > { %v825_v43 = vsel %vm823_vm7, %v807_v36, 0.0  ;;  %v826_v45 = vsel %vm824_vm8, %v811_v39, 0.0 }
 0x115   : > { %v834_v52 = vrot.slane %v825_v43, %v1724_v46  ;;  %v838_v54 = vrot.slane %v826_v45, %v1724_v46  ;;  %v850_v51 = vrot.slane %v825_v43, %v1727_v47  ;;  %v854_v6 = vrot.slane %v826_v45, %v1727_v47 }
 0x116   : > { %v861_v55 = vpop.permute.xlu1 %860  ;;  %v866_v5 = vrot.slane %v825_v43, %v1745_v9  ;;  %v870_v12 = vrot.slane %v826_v45, %v1745_v9  ;;  %v882_v17 = vrot.slane %v825_v43, %v1749_v16  ;;  %v886_v18 = vrot.slane %v826_v45, %v1749_v16 }
 0x117   : > { %v839_v53 = vmul.f32 %v834_v52, %v829_v29  ;;  %v840_v59 = vmul.f32 %v838_v54, %v829_v29  ;;  %v855_v1 = vmul.f32 %v850_v51, %v845_v7  ;;  %v856_v4 = vmul.f32 %v854_v6, %v845_v7 }
 0x118   : > { %v871_v20 = vmul.f32 %v866_v5, %v861_v55  ;;  %v872_v21 = vmul.f32 %v870_v12, %v861_v55  ;;  %v997_v54 = vrot.slane %v989_v44, %v1727_v47 }
 0x119   : > { %v841_v8 = vadd.f32 %v839_v53, %v800_v60  ;;  %v842_v2 = vadd.f32 %v840_v59, %v801_v61  ;;  %v1004_v59 = vpop.permute.xlu0 %1003 }
 0x11a   : > { %vm999_vm15 = vcmp.eq.s32.totalorder %v997_v54, 1 }
 0x11b   : > { %v877_v62 = vpop.permute.xlu1 %876  ;;  %v857_v13 = vadd.f32 %v855_v1, %v841_v8  ;;  %v858_v14 = vadd.f32 %v856_v4, %v842_v2 }
 0x11c   : > { %v887_v24 = vmul.f32 %v882_v17, %v877_v62  ;;  %v888_v26 = vmul.f32 %v886_v18, %v877_v62 }
 0x11d   : > { %v873_v30 = vadd.f32 %v871_v20, %v857_v13  ;;  %v874_v31 = vadd.f32 %v872_v21, %v858_v14  ;;  %v1020_v12 = vpop.permute.xlu0 %1019 }
 0x11f   : > { %v892_v11 = vpop.permute.xlu1 %891  ;;  %v889_v35 = vadd.f32 %v887_v24, %v873_v30  ;;  %v890_v36 = vadd.f32 %v888_v26, %v874_v31 }
 0x123   : > { %v894_v19 = vpop.permute.xlu1 %893 }
 0x124   : > { %v896_v22 = vsel %vm895_vm10, %v892_v11, %v894_v19  ;;  %v900_v23 = vsel %vm895_vm10, %v894_v19, %v892_v11 }
 0x125   : > { %v912_v28 = vsel %vm910_vm11, %v896_v22, 0.0  ;;  %v913_v29 = vsel %vm911_vm12, %v900_v23, 0.0 }
 0x126   : > { %v921_v32 = vrot.slane %v912_v28, %v1724_v46  ;;  %v925_v15 = vrot.slane %v913_v29, %v1724_v46  ;;  %v937_v39 = vrot.slane %v912_v28, %v1727_v47  ;;  %v941_v40 = vrot.slane %v913_v29, %v1727_v47 }
 0x127   : > { %v948_v33 = vpop.permute.xlu1 %947  ;;  %v953_v52 = vrot.slane %v912_v28, %v1745_v9  ;;  %v957_v38 = vrot.slane %v913_v29, %v1745_v9  ;;  %v969_v53 = vrot.slane %v912_v28, %v1749_v16  ;;  %v973_v0 = vrot.slane %v913_v29, %v1749_v16 }
 0x128   : > { %v926_v34 = vmul.f32 %v921_v32, %v916_v27  ;;  %v927_v25 = vmul.f32 %v925_v15, %v916_v27  ;;  %v942_v49 = vmul.f32 %v937_v39, %v932_v41  ;;  %v943_v50 = vmul.f32 %v941_v40, %v932_v41 }
 0x129   : > { %v958_v58 = vmul.f32 %v953_v52, %v948_v33  ;;  %v959_v56 = vmul.f32 %v957_v38, %v948_v33  ;;  %v1070_v33 = vpop.permute.xlu0 %1069 }
 0x12a   : > { %v928_v43 = vadd.f32 %v926_v34, %v889_v35  ;;  %v929_v45 = vadd.f32 %v927_v25, %v890_v36 }
 0x12c   : > { %v964_v48 = vpop.permute.xlu1 %963  ;;  %v944_v55 = vadd.f32 %v942_v49, %v928_v43  ;;  %v945_v57 = vadd.f32 %v943_v50, %v929_v45 }
 0x12d   : > { %v974_v60 = vmul.f32 %v969_v53, %v964_v48  ;;  %v975_v61 = vmul.f32 %v973_v0, %v964_v48 }
 0x12e   : > { %v960_v62 = vadd.f32 %v958_v58, %v944_v55  ;;  %v961_v63 = vadd.f32 %v959_v56, %v945_v57 }
 0x130   : > { %v979_v42 = vpop.permute.xlu1 %978  ;;  %v976_v4 = vadd.f32 %v974_v60, %v960_v62  ;;  %v977_v5 = vadd.f32 %v975_v61, %v961_v63 }
 0x134   : > { %v981_v51 = vpop.permute.xlu1 %980 }
 0x135   : > { %v983_v6 = vsel %vm982_vm9, %v979_v42, %v981_v51  ;;  %v987_v7 = vsel %vm982_vm9, %v981_v51, %v979_v42 }
 0x136   : > { %v1000_v8 = vsel %vm998_vm14, %v983_v6, 0.0  ;;  %v1001_v2 = vsel %vm999_vm15, %v987_v7, 0.0 }
 0x137   : > { %v1009_v10 = vrot.slane %v1000_v8, %v1724_v46  ;;  %v1013_v3 = vrot.slane %v1001_v2, %v1724_v46  ;;  %v1025_v11 = vrot.slane %v1000_v8, %v1727_v47  ;;  %v1029_v1 = vrot.slane %v1001_v2, %v1727_v47 }
 0x138   : > { %v1036_v13 = vpop.permute.xlu1 %1035  ;;  %v1041_v18 = vrot.slane %v1000_v8, %v1745_v9  ;;  %v1045_v19 = vrot.slane %v1001_v2, %v1745_v9  ;;  %v1057_v46 = vrot.slane %v1000_v8, %v1749_v16  ;;  %v1061_v24 = vrot.slane %v1001_v2, %v1749_v16 }
 0x139   : > { %v1014_v14 = vmul.f32 %v1009_v10, %v1004_v59  ;;  %v1015_v17 = vmul.f32 %v1013_v3, %v1004_v59  ;;  %v1030_v22 = vmul.f32 %v1025_v11, %v1020_v12  ;;  %v1031_v23 = vmul.f32 %v1029_v1, %v1020_v12 }
 0x13a   : > { %v1046_v27 = vmul.f32 %v1041_v18, %v1036_v13  ;;  %v1047_v28 = vmul.f32 %v1045_v19, %v1036_v13 }
 0x13b   : > { %v1016_v20 = vadd.f32 %v1014_v14, %v976_v4  ;;  %v1017_v21 = vadd.f32 %v1015_v17, %v977_v5 }
 0x13d   : > { %v1032_v26 = vadd.f32 %v1030_v22, %v1016_v20  ;;  %v1033_v47 = vadd.f32 %v1031_v23, %v1017_v21  ;;  %v1052_v29 = vpop.permute.xlu1 %1051 }
 0x13e   : > { %v1062_v30 = vmul.f32 %v1057_v46, %v1052_v29  ;;  %v1063_v31 = vmul.f32 %v1061_v24, %v1052_v29 }
 0x13f   : > { %v1048_v32 = vadd.f32 %v1046_v27, %v1032_v26  ;;  %v1049_v15 = vadd.f32 %v1047_v28, %v1033_v47 }
 0x141   : > { %v1064_v9 = vadd.f32 %v1062_v30, %v1048_v32  ;;  %v1065_v34 = vadd.f32 %v1063_v31, %v1049_v15 }
 0x143   : > { %v1072_v25 = vadd.f32 %v1070_v33, %v1064_v9  ;;  %v1073_v35 = vadd.f32 %v1070_v33, %v1065_v34 }
 0x145   : > { %v1076_v36 = vcombine.low %v1072_v25, %v1073_v35  ;;  %v1080_v39 = vsel %vm1079_vm0, %v1072_v25, 0.0  ;;  %v1081_v16 = vsel %vm1079_vm0, %v1073_v35, 0.0  ;;  %v1087_v40 = vmul.f32 %v1072_v25, %v1072_v25 }
 0x146   : > { %v1082_v41 = vadd.f32 %v1081_v16, %v1080_v39  ;;  %v1088_v43 = vmul.f32 %v1073_v35, %v1073_v35 }
 0x147   : > { %v1089_v45 = vsel %vm1079_vm0, %v1087_v40, 0.0  ;;  %1078 = vst [vmem:[%s241_s16] sm:$0xff] %v1076_v36 }
 0x148   : > { %1083 = vadd.xlane.f32.xlu1 %v1082_v41  ;;  %v1090_v48 = vsel %vm1079_vm0, %v1088_v43, 0.0 }
 0x149   : > { %v1091_v44 = vadd.f32 %v1090_v48, %v1089_v45 }
 0x14b   : > { %1092 = vadd.xlane.f32.xlu0 %v1091_v44 }
 0x14c   : > { %1399 = shalt.err (!%p1396_p10)
}
 0x14d   : > { %s1400_s23 = scalar_lea.hbm %s1113_s8, 128  ;;  %s1404_s12 = scalar_lea.hbm %s1918_s4, 256 }
 0x14e   : > { %p1401_p2 = scmp.ne.s32.totalorder %s1113_s8, %s1400_s23  ;;  %p1405_p7 = scmp.lt.s32.totalorder %s1113_s8, %s1918_s4 }
 0x14f   : > { %p1406_p0 = scmp.lt.s32.totalorder %s1404_s12, %s1400_s23 }
 0x150   : > { %p1402_p4 = pnand %p1401_p2, %p1930_p12 }
 0x151   : > { %p1407_p6 = por %p1406_p0, %p1405_p7 }
 0x152   : > { %p1403_p9 = pneg %p1402_p4 }
 0x154   : > { %p1408_p11 = pnand %p1407_p6, %p1403_p9 }
 0x156   : > { %1411 = shalt.err (!%p1408_p11)
}
 0x157   : > { %1232 = dma.vmem_to_hbm [thread:$0]  (%p1930_p12), %s1116_s25, 128, %s1113_s8, %s1097_s7   ;;  %vm1085_vm2 = vcmask 3072   ;;  %vm1094_vm3 = vcmask 11272  }
 0x158   : > { %p248_p13 = scmp.lt.s32.totalorder %s1549_s22, 1 }
 0x15a   : > { %s1938_s22 = smov (!%p248_p13, %s1549_s22), 1 }
 0x15b   : > { %s1221_s29 = sshll.u32 %s1938_s22, 2 }
 0x15c   : > { %s251_s9 = scalar_lea.vmem %s1919_s5, %s1221_s29 }
 0x1d1   : > { %v1084_v49 = vpop.xlane.xlu1 %1083 }
 0x1d2   : > { %1086 = vst.msk [vmem:[%s251_s9] sm:$0xf] %vm1085_vm2, %v1084_v49 }
 0x1d4   : > { %v1093_v50 = vpop.xlane.xlu0 %1092 }
 0x1d5   : > { %1095 = vst.msk [vmem:[%s251_s9] sm:$0xf] %vm1094_vm3, %v1093_v50 }
 0x1d6 PF: > { %s1130_s30 = sand.u32 1, %s1438_s18   ;;  %p1931_p1 = scmp.ne.s32.totalorder %s1925_s6, 0 }
 0x1d7   : > { %p1932_p12 = scmp.ge.s32.totalorder %s1450_s21, 2  ;;  %s1131_s22 = scalar_lea.sflag [#allocation4], %s1130_s30 }
 0x1d9   : > { %p1239_p3 = pnand %p1932_p12, %p1931_p1 }
 0x1db   : > { %p1240_p5 = pneg %p1239_p3 }
 0x1dd   : > { %1433 = dma.done.wait (%p1240_p5), %s1131_s22, 128  }
 0x1de   : > { %1435 = vsyncadd (%p1240_p5), %s1131_s22, 4294967168  ;;  %p19_p8 = scmp.ge.s32.totalorder %s1553_s24, 4   ;;  %s1933_s18 = smov %s1442_s19 }
 0x1df   : > { %s1934_s19 = smov %s1446_s20  ;;  %s1935_s20 = smov %s1565_s27 }
 0x1e0   : > { %s1936_s21 = smov %s1553_s24  ;;  %21 = sbr.rel (!%p19_p8) target bundleno = 5 (0x5), region = 94 }
 0x1e5   :  { %1143 = vsyncpa [#allocation3], 1 }
 0x1e6   :  { %1145 = vsyncpa [#allocation3 + $0x1], 1 }
 0x1e7   :  { %1146 = vsyncpa [#allocation4], 1 }
 0x1e8   :  { %1148 = vsyncpa [#allocation4 + $0x1], 1 }

</bundles_post_ra>
